<compile_context>
chip_gen: v7x
topology: tpu7x:2x2x1
jax: 0.10.0
libtpu: 0.0.40
codegen_flags: <defaults>
</compile_context>

<pallas_src>
import jax
import jax.numpy as jnp
from jax.experimental import pallas as pl
from jax.experimental.pallas import tpu as pltpu

_NEG_INF = float("-inf")


# --------------------------------------------------------------------------- #
# Shared math: (1 + inter + intra) per virtual-concat channel, all in f32.
# --------------------------------------------------------------------------- #
def _channel_scales(avg3, max3, max_s, w1i, w2i, w1a, w2a, C):
    """avg3, max3: (Bt, 3C) per-branch pooled stats of [x1|x2|x3].
    max_s: (Bt, C) max-pooled stats of s = x1+x2+x3.  Returns (Bt, 3C) f32."""
    bt = avg3.shape[0]

    # inter-branch CAM over the virtual 3C channels (avg & max share the MLP,
    # so stack them into one LHS -> one fc1 + one fc2 MXU issue).
    z_i = jnp.concatenate([avg3, max3], axis=0)                      # (2Bt, 3C)
    h_i = jnp.maximum(
        jnp.dot(z_i, w1i, preferred_element_type=jnp.float32), 0.0)
    y_i = jnp.dot(h_i, w2i, preferred_element_type=jnp.float32)     # (2Bt, 3C)
    inter = jax.nn.sigmoid(y_i[:bt] + y_i[bt:])                     # (Bt, 3C)

    # intra-branch CAM over the summed C channels (avg pooling is linear, so
    # avg(s) is derived from the per-branch averages; max(s) is accumulated).
    avg_s = avg3[:, 0:C] + avg3[:, C:2 * C] + avg3[:, 2 * C:3 * C]  # (Bt, C)
    z_s = jnp.concatenate([avg_s, max_s], axis=0)                   # (2Bt, C)
    h_s = jnp.maximum(
        jnp.dot(z_s, w1a, preferred_element_type=jnp.float32), 0.0)
    y_s = jnp.dot(h_s, w2a, preferred_element_type=jnp.float32)     # (2Bt, C)
    intra = jax.nn.sigmoid(y_s[:bt] + y_s[bt:])                     # (Bt, C)

    return 1.0 + inter + jnp.concatenate([intra, intra, intra], axis=1)


# --------------------------------------------------------------------------- #
# Single-pass kernel: whole (possibly lane-padded) spatial extent in one block.
# --------------------------------------------------------------------------- #
def _make_single_pass_kernel(C, hw_true):
    def kernel(x1_ref, x2_ref, x3_ref, w1i_ref, w2i_ref, w1a_ref, w2a_ref,
               o_ref):
        bt, _, hwp = x1_ref.shape
        x1 = x1_ref[...]
        x2 = x2_ref[...]
        x3 = x3_ref[...]

        if hwp != hw_true:   # spatial axis was zero-padded to a lane multiple
            lane = jax.lax.broadcasted_iota(jnp.int32, (bt, C, hwp), 2)
            valid = lane < hw_true
            mask = lambda t: jnp.where(valid, t, _NEG_INF)
        else:
            mask = lambda t: t

        inv_hw = jnp.float32(1.0 / hw_true)

        def pool(x):                      # (Bt, C, HWp) -> f32 (Bt, C) x 2
            a = jnp.sum(x, axis=-1, dtype=jnp.float32) * inv_hw   # pads are 0
            m = jnp.max(mask(x), axis=-1).astype(jnp.float32)
            return a, m

        a1, m1 = pool(x1)
        a2, m2 = pool(x2)
        a3, m3 = pool(x3)
        s = x1 + x2 + x3                                           # I/O dtype
        max_s = jnp.max(mask(s), axis=-1).astype(jnp.float32)

        scale = _channel_scales(
            jnp.concatenate([a1, a2, a3], axis=1),
            jnp.concatenate([m1, m2, m3], axis=1),
            max_s,
            w1i_ref[...], w2i_ref[...], w1a_ref[...], w2a_ref[...], C)
        if o_ref.dtype != jnp.float32:     # bf16 VALU path on v6e/v7x
            scale = scale.astype(o_ref.dtype)

        # out_i = x_i * (1 + inter_i + intra), written per channel group.
        o_ref[:, 0:C, :] = (x1 * scale[:, 0:C][:, :, None]).astype(o_ref.dtype)
        o_ref[:, C:2 * C, :] = (
            x2 * scale[:, C:2 * C][:, :, None]).astype(o_ref.dtype)
        o_ref[:, 2 * C:3 * C, :] = (
            x3 * scale[:, 2 * C:3 * C][:, :, None]).astype(o_ref.dtype)

    return kernel


# --------------------------------------------------------------------------- #
# Chunked two-phase kernel: phase 0 pools HW chunks, phase 1 scales + writes.
# --------------------------------------------------------------------------- #
def _make_chunked_kernel(C, hw_true, padded):
    def kernel(x1_ref, x2_ref, x3_ref, w1i_ref, w2i_ref, w1a_ref, w2a_ref,
               o_ref, sum3_ref, max3_ref, maxs_ref, scale_ref):
        phase = pl.program_id(1)
        k = pl.program_id(2)
        bt, _, hwc = x1_ref.shape

        x1 = x1_ref[...]
        x2 = x2_ref[...]
        x3 = x3_ref[...]

        if padded:   # last chunk holds zero-padded lanes: mask them out of max
            lane = jax.lax.broadcasted_iota(jnp.int32, (bt, C, hwc), 2)
            valid = (k * hwc + lane) < hw_true
            mask = lambda t: jnp.where(valid, t, _NEG_INF)
        else:
            mask = lambda t: t

        @pl.when(jnp.logical_and(phase == 0, k == 0))
        def _init():
            sum3_ref[...] = jnp.zeros(sum3_ref.shape, sum3_ref.dtype)
            max3_ref[...] = jnp.full(max3_ref.shape, _NEG_INF, max3_ref.dtype)
            maxs_ref[...] = jnp.full(maxs_ref.shape, _NEG_INF, maxs_ref.dtype)

        @pl.when(phase == 0)
        def _pool():
            def part(x):
                sm = jnp.sum(x, axis=-1, dtype=jnp.float32)    # pads are 0
                mx = jnp.max(mask(x), axis=-1).astype(jnp.float32)
                return sm, mx

            s1, m1 = part(x1)
            s2, m2 = part(x2)
            s3, m3 = part(x3)
            ssum = x1 + x2 + x3
            ms = jnp.max(mask(ssum), axis=-1).astype(jnp.float32)

            sum3_ref[...] = sum3_ref[...] + jnp.concatenate([s1, s2, s3], axis=1)
            max3_ref[...] = jnp.maximum(
                max3_ref[...], jnp.concatenate([m1, m2, m3], axis=1))
            maxs_ref[...] = jnp.maximum(maxs_ref[...], ms)

        @pl.when(jnp.logical_and(phase == 1, k == 0))
        def _finalize_scale():
            avg3 = sum3_ref[...] * jnp.float32(1.0 / hw_true)
            scale_ref[...] = _channel_scales(
                avg3, max3_ref[...], maxs_ref[...],
                w1i_ref[...], w2i_ref[...], w1a_ref[...], w2a_ref[...], C)

        @pl.when(phase == 1)
        def _apply():
            scale = scale_ref[...]
            if o_ref.dtype != jnp.float32:
                scale = scale.astype(o_ref.dtype)
            o_ref[:, 0:C, :] = (
                x1 * scale[:, 0:C][:, :, None]).astype(o_ref.dtype)
            o_ref[:, C:2 * C, :] = (
                x2 * scale[:, C:2 * C][:, :, None]).astype(o_ref.dtype)
            o_ref[:, 2 * C:3 * C, :] = (
                x3 * scale[:, 2 * C:3 * C][:, :, None]).astype(o_ref.dtype)

    return kernel


# --------------------------------------------------------------------------- #
# Hardware query helpers.
# --------------------------------------------------------------------------- #
def _tpu_vmem_and_cores():
    """(physical VMEM bytes, # TensorCores) with conservative fallbacks."""
    vmem_cap = 128 * 1024 * 1024
    num_tc = 1
    try:
        info = pltpu.get_tpu_info()
        cap = getattr(info, "vmem_capacity_bytes", None)
        if cap:
            vmem_cap = int(cap)
        for attr in ("num_tensorcores", "tensorcore_count", "num_cores"):
            v = getattr(info, attr, None)
            if v is not None:
                num_tc = max(1, int(v))
                break
        else:
            # v7x signature: 64 MiB VMEM per TensorCore, two TCs per chip.
            num_tc = 2 if vmem_cap <= (64 << 20) else 1
    except Exception:
        pass
    return vmem_cap, num_tc


# --------------------------------------------------------------------------- #
# Wrapper.
# --------------------------------------------------------------------------- #
def residual_ecam(x1, x2, x3, w1_inter, w2_inter, w1_intra, w2_intra,
                  *, hw_block_limit=None):
    """x1, x2, x3: NCHW (B, C, H, W).  Returns (B, 3C, H, W).

    1x1-conv weights are stored as (in, out) matmul matrices:
      w1_inter: (3C, 3C//ratio)       w2_inter: (3C//ratio, 3C)
      w1_intra: (C, C//(ratio//4))    w2_intra: (C//(ratio//4), C)
    `hw_block_limit` (test hook) forces the chunked path when the padded HW
    exceeds it.
    """
    B, C, H, W = x1.shape
    assert x2.shape == x1.shape and x3.shape == x1.shape
    C3 = 3 * C
    HW = H * W
    dtype = x1.dtype
    itemsize = jnp.dtype(dtype).itemsize
    LANE = 128

    vmem_cap, num_tc = _tpu_vmem_and_cores()
    # Target pipeline footprint ~40% of physical VMEM: leaves headroom for the
    # compiler's internal scratch and the (small) weight buffers.
    budget = max(4 << 20, int(vmem_cap * 0.40))

    def per_b_bytes(hw_block):
        # Double-buffered inputs AND output, plus f32-equivalent temporaries
        # (s, masked copies, pre-store products) -- this is the real peak.
        io = 2 * (3 + 3) * C * hw_block * itemsize
        tmp = 4 * C * hw_block * 4
        return io + tmp

    hw_pad128 = -(-HW // LANE) * LANE

    use_chunked = per_b_bytes(hw_pad128) > budget
    if hw_block_limit is not None:
        use_chunked = use_chunked or hw_pad128 > hw_block_limit

    if not use_chunked:
        # ---- single pass: whole (padded) spatial extent in one block -------
        # Pad HW to a lane multiple only when cheap (<= 12.5% extra traffic);
        # otherwise keep the exact HW (full-dim block is legal, masked tails).
        if HW % LANE != 0 and (hw_pad128 - HW) * 8 <= HW:
            HWp = hw_pad128
        else:
            HWp = HW
        bt = max(1, min(B, budget // max(1, per_b_bytes(HWp))))
        if num_tc > 1 and B >= 2:     # keep >=2 grid steps only on multi-TC chips
            bt = min(bt, pl.cdiv(B, num_tc))
        nb = pl.cdiv(B, bt)

        kernel = _make_single_pass_kernel(C, HW)
        x_spec = pl.BlockSpec((bt, C, HWp), lambda b: (b, 0, 0))
        w_spec = lambda w: pl.BlockSpec(w.shape, lambda b: (0, 0))
        out_spec = pl.BlockSpec((bt, C3, HWp), lambda b: (b, 0, 0))
        grid = (nb,)
        dims = ("parallel",)
        scratch = ()
        footprint = bt * per_b_bytes(HWp)
        bytes_accessed = (3 + 3) * B * C * HWp * itemsize
    else:
        # ---- chunked two-phase: pool pass, then scale/store pass -----------
        bt = min(B, 8)
        if num_tc > 1 and B >= 2:
            bt = min(bt, max(1, pl.cdiv(B, num_tc)))

        def pick_chunk(bt_):
            c = (budget // max(1, bt_ * per_b_bytes(1))) // LANE * LANE
            return int(max(LANE, min(c, 8192)))

        chunk = pick_chunk(bt)
        while bt > 1 and bt * per_b_bytes(chunk) > budget:
            bt -= 1
            chunk = pick_chunk(bt)
        if hw_block_limit is not None:
            chunk = max(LANE, min(chunk, (max(LANE, hw_block_limit) // LANE) * LANE))

        HWp = -(-HW // chunk) * chunk
        nk = HWp // chunk
        nb = pl.cdiv(B, bt)

        kernel = _make_chunked_kernel(C, HW, padded=(HWp != HW))
        x_spec = pl.BlockSpec((bt, C, chunk), lambda b, p, k: (b, 0, k))
        w_spec = lambda w: pl.BlockSpec(w.shape, lambda b, p, k: (0, 0))
        # Phase 0 never writes the output; collapsing its block index onto
        # chunk 0 keeps the output buffer resident (no garbage writebacks).
        out_spec = pl.BlockSpec((bt, C3, chunk), lambda b, p, k: (b, 0, k * p))
        grid = (nb, 2, nk)
        dims = ("parallel", "arbitrary", "arbitrary")
        scratch = (pltpu.VMEM((bt, C3), jnp.float32),   # per-branch sum pooling
                   pltpu.VMEM((bt, C3), jnp.float32),   # per-branch max pooling
                   pltpu.VMEM((bt, C), jnp.float32),    # max pooling of x1+x2+x3
                   pltpu.VMEM((bt, C3), jnp.float32))   # cached (1+inter+intra)
        footprint = bt * per_b_bytes(chunk) + 4 * bt * C3 * 4
        bytes_accessed = (2 * 3 + 3) * B * C * HWp * itemsize  # inputs read 2x

    # Raise the scoped-VMEM limit to cover the true footprint (double-buffered
    # I/O + temporaries), capped well below physical VMEM.
    vmem_limit = int(min(int(vmem_cap * 0.75),
                         max(32 << 20, 2 * footprint + (4 << 20))))

    cr_i = w1_inter.shape[1]
    cr_a = w1_intra.shape[1]
    cost = pl.CostEstimate(
        flops=int(B * (8 * C3 * cr_i + 8 * C * cr_a + 4 * C3 * HWp)),
        transcendentals=int(B * (C3 + C)),
        bytes_accessed=int(bytes_accessed))

    def flat(x):
        xk = x.reshape(B, C, HW)
        if HWp != HW:
            xk = jnp.pad(xk, ((0, 0), (0, 0), (0, HWp - HW)))
        return xk

    # TODO(synk): verify on an xprof trace that the "parallel" batch axis lands
    # on both v7x TensorCores; switch to pltpu.CORE_PARALLEL if one core idles.
    out = pl.pallas_call(
        kernel,
        out_shape=jax.ShapeDtypeStruct((B, C3, HWp), dtype),
        grid=grid,
        in_specs=[x_spec, x_spec, x_spec,
                  w_spec(w1_inter), w_spec(w2_inter),
                  w_spec(w1_intra), w_spec(w2_intra)],
        out_specs=out_spec,
        scratch_shapes=scratch,
        compiler_params=pltpu.CompilerParams(
            dimension_semantics=dims,
            vmem_limit_bytes=vmem_limit),
        cost_estimate=cost,
    )(flat(x1), flat(x2), flat(x3), w1_inter, w2_inter, w1_intra, w2_intra)

    if HWp != HW:
        out = out[:, :, :HW]
    return out.reshape(B, C3, H, W)


# --------------------------------------------------------------------------- #
# Pure-JAX reference mirroring the PyTorch module (NCHW).
# --------------------------------------------------------------------------- #
def _reference(x1, x2, x3, w1_inter, w2_inter, w1_intra, w2_intra):
    def cam(x, w1, w2):
        avg = jnp.mean(x, axis=(2, 3))               # (B, Cf)
        mx = jnp.max(x, axis=(2, 3))                 # (B, Cf)

        def mlp(v):
            return jnp.maximum(v @ w1, 0.0) @ w2

        return jax.nn.sigmoid(mlp(avg) + mlp(mx))[:, :, None, None]

    concat = jnp.concatenate([x1, x2, x3], axis=1)
    inter = cam(concat, w1_inter, w2_inter) * concat
    s = x1 + x2 + x3
    intra = cam(s, w1_intra, w2_intra)
    intra = jnp.tile(intra, (1, 3, 1, 1)) * concat
    return concat + inter + intra


if __name__ == "__main__":
    embedding_dim = 32
    ratio = 16
    C = embedding_dim
    C3 = 3 * C

    kw = jax.random.split(jax.random.PRNGKey(0), 4)
    # Conv2d(in, out, 1, bias=False) weights stored as (in, out) matrices.
    w1_inter = 0.1 * jax.random.normal(kw[0], (C3, C3 // ratio), jnp.float32)
    w2_inter = 0.1 * jax.random.normal(kw[1], (C3 // ratio, C3), jnp.float32)
    w1_intra = 0.1 * jax.random.normal(kw[2], (C, C // (ratio // 4)), jnp.float32)
    w2_intra = 0.1 * jax.random.normal(kw[3], (C // (ratio // 4), C), jnp.float32)

    def check(B, H, W, hw_block_limit=None, seed=1):
        ks = jax.random.split(jax.random.PRNGKey(seed), 3)
        x1 = jax.random.normal(ks[0], (B, C, H, W), jnp.float32)
        x2 = jax.random.normal(ks[1], (B, C, H, W), jnp.float32)
        x3 = jax.random.normal(ks[2], (B, C, H, W), jnp.float32)
        out = residual_ecam(x1, x2, x3, w1_inter, w2_inter, w1_intra, w2_intra,
                            hw_block_limit=hw_block_limit)
        out = jax.block_until_ready(out)
        ref = _reference(x1, x2, x3, w1_inter, w2_inter, w1_intra, w2_intra)
        assert out.shape == (B, C3, H, W), out.shape
        assert jnp.allclose(out, ref, rtol=1e-3, atol=1e-3), \
            ("mismatch", B, H, W, hw_block_limit)

    check(2, 16, 16)                        # single pass, lane-aligned HW=256
    check(3, 25, 10)                        # single pass, HW=250 padded to 256
    check(2, 9, 9)                          # single pass, unaligned HW=81 kept
    check(2, 16, 16, hw_block_limit=128)    # chunked two-phase path, 2 chunks
    check(2, 25, 10, hw_block_limit=128)    # chunked + padded last chunk

    print("KERNEL_OK")
</pallas_src>

<mosaic_0001>
module attributes {stable_mosaic.version = 11 : i64} {
  func.func @kernel(%arg0: i32, %arg1: memref<2x32x256xf32, #tpu.memory_space<vmem>>, %arg2: memref<2x32x256xf32, #tpu.memory_space<vmem>>, %arg3: memref<2x32x256xf32, #tpu.memory_space<vmem>>, %arg4: memref<96x6xf32, #tpu.memory_space<vmem>>, %arg5: memref<6x96xf32, #tpu.memory_space<vmem>>, %arg6: memref<32x8xf32, #tpu.memory_space<vmem>>, %arg7: memref<8x32xf32, #tpu.memory_space<vmem>>, %arg8: memref<2x96x256xf32, #tpu.memory_space<vmem>>) attributes {dimension_semantics = [#tpu.dimension_semantics<parallel>], iteration_bounds = array<i64: 1>, scalar_prefetch = 0 : i64, scratch_operands = 0 : i64, tpu.core_type = #tpu.core_type<tc>, window_params = [{transform_indices = @transform_0, window_bounds = array<i64: 2, 32, 256>}, {transform_indices = @transform_1, window_bounds = array<i64: 2, 32, 256>}, {transform_indices = @transform_2, window_bounds = array<i64: 2, 32, 256>}, {pipeline_mode = #tpu.pipeline_mode<synchronous>, transform_indices = @transform_3, window_bounds = array<i64: 96, 6>}, {pipeline_mode = #tpu.pipeline_mode<synchronous>, transform_indices = @transform_4, window_bounds = array<i64: 6, 96>}, {pipeline_mode = #tpu.pipeline_mode<synchronous>, transform_indices = @transform_5, window_bounds = array<i64: 32, 8>}, {pipeline_mode = #tpu.pipeline_mode<synchronous>, transform_indices = @transform_6, window_bounds = array<i64: 8, 32>}, {transform_indices = @transform_7, window_bounds = array<i64: 2, 96, 256>}]} {
    %c0 = arith.constant 0 : index
    %c0_0 = arith.constant 0 : index
    %c0_1 = arith.constant 0 : index
    %0 = vector.load %arg1[%c0, %c0_0, %c0_1] : memref<2x32x256xf32, #tpu.memory_space<vmem>>, vector<2x32x256xf32>
    %c0_2 = arith.constant 0 : index
    %c0_3 = arith.constant 0 : index
    %c0_4 = arith.constant 0 : index
    %1 = vector.load %arg2[%c0_2, %c0_3, %c0_4] : memref<2x32x256xf32, #tpu.memory_space<vmem>>, vector<2x32x256xf32>
    %c0_5 = arith.constant 0 : index
    %c0_6 = arith.constant 0 : index
    %c0_7 = arith.constant 0 : index
    %2 = vector.load %arg3[%c0_5, %c0_6, %c0_7] : memref<2x32x256xf32, #tpu.memory_space<vmem>>, vector<2x32x256xf32>
    %cst = arith.constant dense<0.000000e+00> : vector<2x32xf32>
    %3 = vector.multi_reduction <add>, %0, %cst [2] : vector<2x32x256xf32> to vector<2x32xf32>
    %cst_8 = arith.constant 3.906250e-03 : f32
    %4 = vector.broadcast %cst_8 : f32 to vector<2x32xf32>
    %5 = arith.mulf %3, %4 : vector<2x32xf32>
    %cst_9 = arith.constant dense<0xFF800000> : vector<2x32xf32>
    %6 = vector.multi_reduction <maximumf>, %0, %cst_9 [2] : vector<2x32x256xf32> to vector<2x32xf32>
    %cst_10 = arith.constant dense<0.000000e+00> : vector<2x32xf32>
    %7 = vector.multi_reduction <add>, %1, %cst_10 [2] : vector<2x32x256xf32> to vector<2x32xf32>
    %cst_11 = arith.constant 3.906250e-03 : f32
    %8 = vector.broadcast %cst_11 : f32 to vector<2x32xf32>
    %9 = arith.mulf %7, %8 : vector<2x32xf32>
    %cst_12 = arith.constant dense<0xFF800000> : vector<2x32xf32>
    %10 = vector.multi_reduction <maximumf>, %1, %cst_12 [2] : vector<2x32x256xf32> to vector<2x32xf32>
    %cst_13 = arith.constant dense<0.000000e+00> : vector<2x32xf32>
    %11 = vector.multi_reduction <add>, %2, %cst_13 [2] : vector<2x32x256xf32> to vector<2x32xf32>
    %cst_14 = arith.constant 3.906250e-03 : f32
    %12 = vector.broadcast %cst_14 : f32 to vector<2x32xf32>
    %13 = arith.mulf %11, %12 : vector<2x32xf32>
    %cst_15 = arith.constant dense<0xFF800000> : vector<2x32xf32>
    %14 = vector.multi_reduction <maximumf>, %2, %cst_15 [2] : vector<2x32x256xf32> to vector<2x32xf32>
    %15 = arith.addf %0, %1 : vector<2x32x256xf32>
    %16 = arith.addf %15, %2 : vector<2x32x256xf32>
    %cst_16 = arith.constant dense<0xFF800000> : vector<2x32xf32>
    %17 = vector.multi_reduction <maximumf>, %16, %cst_16 [2] : vector<2x32x256xf32> to vector<2x32xf32>
    %18 = tpu.concatenate %5, %9, %13 in 1 : vector<2x32xf32>, vector<2x32xf32>, vector<2x32xf32> -> vector<2x96xf32>
    %19 = tpu.concatenate %6, %10, %14 in 1 : vector<2x32xf32>, vector<2x32xf32>, vector<2x32xf32> -> vector<2x96xf32>
    %c0_17 = arith.constant 0 : index
    %c0_18 = arith.constant 0 : index
    %20 = vector.load %arg4[%c0_17, %c0_18] : memref<96x6xf32, #tpu.memory_space<vmem>>, vector<96x6xf32>
    %c0_19 = arith.constant 0 : index
    %c0_20 = arith.constant 0 : index
    %21 = vector.load %arg5[%c0_19, %c0_20] : memref<6x96xf32, #tpu.memory_space<vmem>>, vector<6x96xf32>
    %c0_21 = arith.constant 0 : index
    %c0_22 = arith.constant 0 : index
    %22 = vector.load %arg6[%c0_21, %c0_22] : memref<32x8xf32, #tpu.memory_space<vmem>>, vector<32x8xf32>
    %c0_23 = arith.constant 0 : index
    %c0_24 = arith.constant 0 : index
    %23 = vector.load %arg7[%c0_23, %c0_24] : memref<8x32xf32, #tpu.memory_space<vmem>>, vector<8x32xf32>
    %24 = tpu.concatenate %18, %19 in 0 : vector<2x96xf32>, vector<2x96xf32> -> vector<4x96xf32>
    %cst_25 = arith.constant dense<0.000000e+00> : vector<4x6xf32>
    %25 = tpu.matmul %24, %20, %cst_25 {dimension_numbers = #tpu.dot_dimension_numbers<[1], [0], [0], [1], [0, 0, 1, 1], [], []>} : vector<4x96xf32>, vector<96x6xf32>, vector<4x6xf32> -> vector<4x6xf32>
    %cst_26 = arith.constant 0.000000e+00 : f32
    %26 = vector.broadcast %cst_26 : f32 to vector<4x6xf32>
    %27 = arith.maximumf %25, %26 : vector<4x6xf32>
    %cst_27 = arith.constant dense<0.000000e+00> : vector<4x96xf32>
    %28 = tpu.matmul %27, %21, %cst_27 {dimension_numbers = #tpu.dot_dimension_numbers<[1], [0], [0], [1], [0, 0, 1, 1], [], []>} : vector<4x6xf32>, vector<6x96xf32>, vector<4x96xf32> -> vector<4x96xf32>
    %29 = vector.extract_strided_slice %28 {offsets = [0, 0], sizes = [2, 96], strides = [1, 1]} : vector<4x96xf32> to vector<2x96xf32>
    %30 = vector.extract_strided_slice %28 {offsets = [2, 0], sizes = [2, 96], strides = [1, 1]} : vector<4x96xf32> to vector<2x96xf32>
    %31 = arith.addf %29, %30 : vector<2x96xf32>
    %32 = arith.negf %31 : vector<2x96xf32>
    %33 = math.exp %32 : vector<2x96xf32>
    %cst_28 = arith.constant 1.000000e+00 : f32
    %34 = vector.broadcast %cst_28 : f32 to vector<2x96xf32>
    %35 = arith.addf %34, %33 : vector<2x96xf32>
    %36 = arith.divf %34, %35 : vector<2x96xf32>
    %37 = vector.extract_strided_slice %18 {offsets = [0, 0], sizes = [2, 32], strides = [1, 1]} : vector<2x96xf32> to vector<2x32xf32>
    %38 = vector.extract_strided_slice %18 {offsets = [0, 32], sizes = [2, 32], strides = [1, 1]} : vector<2x96xf32> to vector<2x32xf32>
    %39 = arith.addf %37, %38 : vector<2x32xf32>
    %40 = vector.extract_strided_slice %18 {offsets = [0, 64], sizes = [2, 32], strides = [1, 1]} : vector<2x96xf32> to vector<2x32xf32>
    %41 = arith.addf %39, %40 : vector<2x32xf32>
    %42 = tpu.concatenate %41, %17 in 0 : vector<2x32xf32>, vector<2x32xf32> -> vector<4x32xf32>
    %cst_29 = arith.constant dense<0.000000e+00> : vector<4x8xf32>
    %43 = tpu.matmul %42, %22, %cst_29 {dimension_numbers = #tpu.dot_dimension_numbers<[1], [0], [0], [1], [0, 0, 1, 1], [], []>} : vector<4x32xf32>, vector<32x8xf32>, vector<4x8xf32> -> vector<4x8xf32>
    %cst_30 = arith.constant 0.000000e+00 : f32
    %44 = vector.broadcast %cst_30 : f32 to vector<4x8xf32>
    %45 = arith.maximumf %43, %44 : vector<4x8xf32>
    %cst_31 = arith.constant dense<0.000000e+00> : vector<4x32xf32>
    %46 = tpu.matmul %45, %23, %cst_31 {dimension_numbers = #tpu.dot_dimension_numbers<[1], [0], [0], [1], [0, 0, 1, 1], [], []>} : vector<4x8xf32>, vector<8x32xf32>, vector<4x32xf32> -> vector<4x32xf32>
    %47 = vector.extract_strided_slice %46 {offsets = [0, 0], sizes = [2, 32], strides = [1, 1]} : vector<4x32xf32> to vector<2x32xf32>
    %48 = vector.extract_strided_slice %46 {offsets = [2, 0], sizes = [2, 32], strides = [1, 1]} : vector<4x32xf32> to vector<2x32xf32>
    %49 = arith.addf %47, %48 : vector<2x32xf32>
    %50 = arith.negf %49 : vector<2x32xf32>
    %51 = math.exp %50 : vector<2x32xf32>
    %cst_32 = arith.constant 1.000000e+00 : f32
    %52 = vector.broadcast %cst_32 : f32 to vector<2x32xf32>
    %53 = arith.addf %52, %51 : vector<2x32xf32>
    %54 = arith.divf %52, %53 : vector<2x32xf32>
    %cst_33 = arith.constant 1.000000e+00 : f32
    %55 = vector.broadcast %cst_33 : f32 to vector<2x96xf32>
    %56 = arith.addf %55, %36 : vector<2x96xf32>
    %57 = tpu.concatenate %54, %54, %54 in 1 : vector<2x32xf32>, vector<2x32xf32>, vector<2x32xf32> -> vector<2x96xf32>
    %58 = arith.addf %56, %57 : vector<2x96xf32>
    %59 = vector.extract_strided_slice %58 {offsets = [0, 0], sizes = [2, 32], strides = [1, 1]} : vector<2x96xf32> to vector<2x32xf32>
    %60 = vector.shape_cast %59 : vector<2x32xf32> to vector<2x32x1xf32>
    %61 = vector.broadcast %60 : vector<2x32x1xf32> to vector<2x32x256xf32>
    %62 = arith.mulf %0, %61 : vector<2x32x256xf32>
    %c0_34 = arith.constant 0 : index
    %c0_35 = arith.constant 0 : index
    %c0_36 = arith.constant 0 : index
    %63 = vector.load %arg8[%c0_34, %c0_35, %c0_36] : memref<2x96x256xf32, #tpu.memory_space<vmem>>, vector<2x32x256xf32>
    tpu.vector_store %arg8[%c0_34, %c0_35, %c0_36], %62 {strides = array<i32>} : memref<2x96x256xf32, #tpu.memory_space<vmem>>, vector<2x32x256xf32>,
    %64 = vector.extract_strided_slice %58 {offsets = [0, 32], sizes = [2, 32], strides = [1, 1]} : vector<2x96xf32> to vector<2x32xf32>
    %65 = vector.shape_cast %64 : vector<2x32xf32> to vector<2x32x1xf32>
    %66 = vector.broadcast %65 : vector<2x32x1xf32> to vector<2x32x256xf32>
    %67 = arith.mulf %1, %66 : vector<2x32x256xf32>
    %c0_37 = arith.constant 0 : index
    %c32 = arith.constant 32 : index
    %c0_38 = arith.constant 0 : index
    %68 = vector.load %arg8[%c0_37, %c32, %c0_38] : memref<2x96x256xf32, #tpu.memory_space<vmem>>, vector<2x32x256xf32>
    tpu.vector_store %arg8[%c0_37, %c32, %c0_38], %67 {strides = array<i32>} : memref<2x96x256xf32, #tpu.memory_space<vmem>>, vector<2x32x256xf32>,
    %69 = vector.extract_strided_slice %58 {offsets = [0, 64], sizes = [2, 32], strides = [1, 1]} : vector<2x96xf32> to vector<2x32xf32>
    %70 = vector.shape_cast %69 : vector<2x32xf32> to vector<2x32x1xf32>
    %71 = vector.broadcast %70 : vector<2x32x1xf32> to vector<2x32x256xf32>
    %72 = arith.mulf %2, %71 : vector<2x32x256xf32>
    %c0_39 = arith.constant 0 : index
    %c64 = arith.constant 64 : index
    %c0_40 = arith.constant 0 : index
    %73 = vector.load %arg8[%c0_39, %c64, %c0_40] : memref<2x96x256xf32, #tpu.memory_space<vmem>>, vector<2x32x256xf32>
    tpu.vector_store %arg8[%c0_39, %c64, %c0_40], %72 {strides = array<i32>} : memref<2x96x256xf32, #tpu.memory_space<vmem>>, vector<2x32x256xf32>,
    return
  }
  func.func @transform_0(%arg0: i32) -> (i32, i32, i32) {
    %c0_i32 = arith.constant 0 : i32
    %c0_i32_0 = arith.constant 0 : i32
    %c0_i32_1 = arith.constant 0 : i32
    return %arg0, %c0_i32, %c0_i32_0 : i32, i32, i32
  }
  func.func @transform_1(%arg0: i32) -> (i32, i32, i32) {
    %c0_i32 = arith.constant 0 : i32
    %c0_i32_0 = arith.constant 0 : i32
    %c0_i32_1 = arith.constant 0 : i32
    return %arg0, %c0_i32, %c0_i32_0 : i32, i32, i32
  }
  func.func @transform_2(%arg0: i32) -> (i32, i32, i32) {
    %c0_i32 = arith.constant 0 : i32
    %c0_i32_0 = arith.constant 0 : i32
    %c0_i32_1 = arith.constant 0 : i32
    return %arg0, %c0_i32, %c0_i32_0 : i32, i32, i32
  }
  func.func @transform_3(%arg0: i32) -> (i32, i32) {
    %c0_i32 = arith.constant 0 : i32
    %c0_i32_0 = arith.constant 0 : i32
    %c0_i32_1 = arith.constant 0 : i32
    return %c0_i32, %c0_i32_0 : i32, i32
  }
  func.func @transform_4(%arg0: i32) -> (i32, i32) {
    %c0_i32 = arith.constant 0 : i32
    %c0_i32_0 = arith.constant 0 : i32
    %c0_i32_1 = arith.constant 0 : i32
    return %c0_i32, %c0_i32_0 : i32, i32
  }
  func.func @transform_5(%arg0: i32) -> (i32, i32) {
    %c0_i32 = arith.constant 0 : i32
    %c0_i32_0 = arith.constant 0 : i32
    %c0_i32_1 = arith.constant 0 : i32
    return %c0_i32, %c0_i32_0 : i32, i32
  }
  func.func @transform_6(%arg0: i32) -> (i32, i32) {
    %c0_i32 = arith.constant 0 : i32
    %c0_i32_0 = arith.constant 0 : i32
    %c0_i32_1 = arith.constant 0 : i32
    return %c0_i32, %c0_i32_0 : i32, i32
  }
  func.func @transform_7(%arg0: i32) -> (i32, i32, i32) {
    %c0_i32 = arith.constant 0 : i32
    %c0_i32_0 = arith.constant 0 : i32
    %c0_i32_1 = arith.constant 0 : i32
    return %arg0, %c0_i32, %c0_i32_0 : i32, i32, i32
  }
}

</mosaic_0001>

<bundles_post_ra>
// kernel: tpu_custom_call.1
= control target key start
LH: loop header
LB: loop body
LE: loop exit
PB: predicated region body
PF: predicated region fallthrough
CT: control target
= control target key end

     0   :  { %12 = vsyncpa [#allocation3], 0  ;;  %s2181_s0 = inlined_call_operand.vmem [shape: f32[2,32,256], index: 0, kind: input, shape index: {}]   ;;  %s2182_s1 = inlined_call_operand.hbm [shape: f32[2,32,256], index: 1, kind: input, shape index: {}]   ;;  %s2183_s2 = inlined_call_operand.hbm [shape: f32[2,32,256], index: 2, kind: input, shape index: {}]   ;;  %s2184_s3 = inlined_call_operand.vmem [shape: f32[96,6], index: 3, kind: input, shape index: {}]   ;;  %s2185_s4 = inlined_call_operand.vmem [shape: f32[6,96], index: 4, kind: input, shape index: {}]   ;;  %s2186_s5 = inlined_call_operand.vmem [shape: f32[32,8], index: 5, kind: input, shape index: {}]   ;;  %s2187_s6 = inlined_call_operand.vmem [shape: f32[8,32], index: 6, kind: input, shape index: {}]   ;;  %s2188_s7 = inlined_call_operand.hbm [shape: f32[2,96,256], index: 7, kind: output, shape index: {}]  }
   0x1   :  { %13 = vsyncpa [#allocation6], 0 }
   0x2   :  { %14 = vsyncpa [#allocation4], 0  ;;  %s1508_s24 = smov [#allocation2]   ;;  %s1436_s28 = scalar_lea.hbm %s2182_s1, 2048 }
   0x3   :  { %s22_s25 = sshll.u32 %s1508_s24, 4  ;;  %p1437_p0 = scmp.ne.s32.totalorder %s2182_s1, %s1436_s28  ;;  %s23_s25 = int_to_ptr.vmem [resolvable:$true] %s22_s25 }
   0x4   :  { %p1440_p1 = scmp.lt.u32.totalorder %s1436_s28, %s2182_s1 }
   0x6   :  { %p1442_p2 = pnand %p1440_p1, %p1437_p0 }
   0x8   :  { %1445 = shalt.err (!%p1442_p2)
}
   0x9   :  { %s1446_s10 = scalar_lea.vmem %s23_s25, 2048  ;;  %p1451_p4 = scmp.lt.s32.totalorder %s23_s25, %s23_s25 }
   0xa   :  { %p1447_p3 = scmp.ne.s32.totalorder %s23_s25, %s1446_s10  ;;  %p1452_p5 = scmp.lt.s32.totalorder %s1446_s10, %s1446_s10 }
   0xc   :  { %p1453_p6 = por %p1452_p5, %p1451_p4 }
   0xe   :  { %p1454_p7 = pnand %p1453_p6, %p1447_p3 }
  0x10   :  { %1457 = shalt.err (!%p1454_p7)
}
  0x11   :  { %s1509_s11 = smov 256   ;;  %s1510_s12 = smov 16  }
  0x12   :  { %28 = dma.hbm_to_vmem [thread:$0]  %s2182_s1, 2048, %s23_s25, [#allocation3], %s1509_s11, %s1509_s11, %s1510_s12  }
  0x13   :  { %s1511_s15 = smov [#allocation5]   ;;  %s1458_s19 = scalar_lea.hbm %s2183_s2, 2048 }
  0x14   :  { %s34_s16 = sshll.u32 %s1511_s15, 4  ;;  %p1459_p8 = scmp.ne.s32.totalorder %s2183_s2, %s1458_s19  ;;  %s35_s16 = int_to_ptr.vmem [resolvable:$true] %s34_s16 }
  0x15   :  { %p1462_p9 = scmp.lt.u32.totalorder %s1458_s19, %s2183_s2 }
  0x17   :  { %p1464_p10 = pnand %p1462_p9, %p1459_p8 }
  0x19   :  { %1467 = shalt.err (!%p1464_p10)
}
  0x1a   :  { %s1468_s24 = scalar_lea.vmem %s35_s16, 2048  ;;  %p1473_p12 = scmp.lt.s32.totalorder %s35_s16, %s35_s16 }
  0x1b   :  { %p1469_p11 = scmp.ne.s32.totalorder %s35_s16, %s1468_s24  ;;  %p1474_p13 = scmp.lt.s32.totalorder %s1468_s24, %s1468_s24 }
  0x1d   :  { %p1475_p0 = por %p1474_p13, %p1473_p12 }
  0x1f   :  { %p1476_p1 = pnand %p1475_p0, %p1469_p11 }
  0x21   :  { %1479 = shalt.err (!%p1476_p1)
}
  0x22   :  { %40 = dma.hbm_to_vmem [thread:$0]  %s2183_s2, 2048, %s35_s16, [#allocation6], %s1509_s11, %s1509_s11, %s1510_s12  }
  0x23   :  { %1502 = dma.done.wait [#allocation3], 2048  }
  0x24   :  { %1503 = vsyncadd [#allocation3], 4294965248 }
  0x25   :  { %1504 = dma.done.wait [#allocation6], 2048  }
  0x26   :  { %1505 = vsyncadd [#allocation6], 4294965248  ;;  %v1592_v0 = vld [vmem:[%s2181_s0 + $0x40] sm:$0xff]  ;;  %v1597_v1 = vld [vmem:[%s2181_s0 + $0x48] sm:$0xff]  ;;  %vm1513_vm0 = vmmov 0   ;;  %vm346_vm1 = vcmask 130112  }
  0x27   :  { %v1602_v2 = vld [vmem:[%s2181_s0] sm:$0xff]  ;;  %v115_v3 = vadd.f32 %v1597_v1, %v1592_v0  ;;  %v1609_v4 = vld [vmem:[%s2181_s0 + $0x8] sm:$0xff]  ;;  %v1614_v5 = vld [vmem:[%s2181_s0 + $0x50] sm:$0xff]  ;;  %v147_v15 = vmax.f32 %v1592_v0, %v1597_v1  ;;  %vm402_vm2 = vcmask 392512   ;;  %vm353_vm3 = vcmask 195712   ;;  %s1516_s14 = smov 96  }
  0x28   :  { %v1619_v6 = vld [vmem:[%s2181_s0 + $0x58] sm:$0xff]  ;;  %v103_v7 = vadd.f32 %v1609_v4, %v1602_v2  ;;  %v1626_v8 = vld [vmem:[%s2181_s0 + $0x10] sm:$0xff]  ;;  %v135_v13 = vmax.f32 %v1602_v2, %v1609_v4  ;;  %v1649_v18 = vld [vmem:[#allocation2] sm:$0xff]  ;;  %vm360_vm4 = vcmask 261312   ;;  %vm381_vm5 = vcmask 1041409   ;;  %s1517_s1 = smov 32  }
  0x29   :  { %v1631_v9 = vld [vmem:[%s2181_s0 + $0x18] sm:$0xff]  ;;  %116 = vadd.xlane.f32.xlu1 %v115_v3  ;;  %v118_v10 = vadd.f32 %v1619_v6, %v1614_v5  ;;  %v150_v14 = vmax.f32 %v1614_v5, %v1619_v6  ;;  %v1645_v16 = vld [vmem:[#allocation2 + $0x10] sm:$0xff]  ;;  %v1651_v19 = vld [vmem:[#allocation2 + $0x8] sm:$0xff]  ;;  %vm409_vm6 = vcmask 458112   ;;  %vm416_vm7 = vcmask 523712  }
  0x2a   :  { %104 = vadd.xlane.f32.xlu0 %v103_v7  ;;  %v106_v11 = vadd.f32 %v1631_v9, %v1626_v8  ;;  %v138_v12 = vmax.f32 %v1626_v8, %v1631_v9  ;;  %v1647_v17 = vld [vmem:[#allocation2 + $0x18] sm:$0xff]  ;;  %v159_v21 = vadd.f32 %v1651_v19, %v1649_v18  ;;  %v1657_v22 = vld [vmem:[#allocation2 + $0x50] sm:$0xff]  ;;  %v1661_v24 = vld [vmem:[#allocation2 + $0x40] sm:$0xff]  ;;  %v191_v29 = vmax.f32 %v1649_v18, %v1651_v19 }
  0x2b   :  { %v162_v20 = vadd.f32 %v1647_v17, %v1645_v16  ;;  %v1659_v23 = vld [vmem:[#allocation2 + $0x58] sm:$0xff]  ;;  %v1663_v25 = vld [vmem:[#allocation2 + $0x48] sm:$0xff]  ;;  %v194_v28 = vmax.f32 %v1645_v16, %v1647_v17  ;;  %v1680_v32 = vld [vmem:[%s2181_s0 + $0x60] sm:$0xff]  ;;  %vm494_vm8 = vcmask 261120   ;;  %vm457_vm9 = vcmask 654912  }
  0x2c   :  { %v174_v26 = vadd.f32 %v1659_v23, %v1657_v22  ;;  %v171_v27 = vadd.f32 %v1663_v25, %v1661_v24  ;;  %v206_v30 = vmax.f32 %v1657_v22, %v1659_v23  ;;  %v203_v31 = vmax.f32 %v1661_v24, %v1663_v25  ;;  %v1685_v33 = vld [vmem:[%s2181_s0 + $0x68] sm:$0xff]  ;;  %v1690_v34 = vld [vmem:[%s2181_s0 + $0x20] sm:$0xff]  ;;  %v1721_v48 = vld [vmem:[#allocation5 + $0x10] sm:$0xff] }
  0x2d   :  { %119 = vadd.xlane.f32.xlu1 %v118_v10  ;;  %v1695_v35 = vld [vmem:[%s2181_s0 + $0x28] sm:$0xff]  ;;  %v121_v36 = vadd.f32 %v1685_v33, %v1680_v32  ;;  %v153_v38 = vmax.f32 %v1680_v32, %v1685_v33  ;;  %v1705_v40 = vld [vmem:[#allocation2 + $0x60] sm:$0xff]  ;;  %v1723_v49 = vld [vmem:[#allocation5 + $0x18] sm:$0xff]  ;;  %vm464_vm10 = vcmask 720512   ;;  %vm471_vm11 = vcmask 786112  }
  0x2e   :  { %107 = vadd.xlane.f32.xlu0 %v106_v11  ;;  %v109_v37 = vadd.f32 %v1695_v35, %v1690_v34  ;;  %v141_v39 = vmax.f32 %v1690_v34, %v1695_v35  ;;  %v1707_v41 = vld [vmem:[#allocation2 + $0x68] sm:$0xff]  ;;  %v1709_v42 = vld [vmem:[#allocation2 + $0x20] sm:$0xff]  ;;  %v218_v52 = vadd.f32 %v1723_v49, %v1721_v48  ;;  %v1733_v54 = vld [vmem:[#allocation5 + $0x50] sm:$0xff]  ;;  %v250_v60 = vmax.f32 %v1721_v48, %v1723_v49 }
  0x2f   :  { %v1711_v43 = vld [vmem:[#allocation2 + $0x28] sm:$0xff]  ;;  %v177_v44 = vadd.f32 %v1707_v41, %v1705_v40  ;;  %v209_v46 = vmax.f32 %v1705_v40, %v1707_v41  ;;  %v1725_v50 = vld [vmem:[#allocation5] sm:$0xff]  ;;  %v1735_v55 = vld [vmem:[#allocation5 + $0x58] sm:$0xff]  ;;  %vm496_vm12 = vcmask 523264   ;;  %vm665_vm13 = vcmask 1041408  }
  0x30   :  { %v165_v45 = vadd.f32 %v1711_v43, %v1709_v42  ;;  %v197_v47 = vmax.f32 %v1709_v42, %v1711_v43  ;;  %v1727_v51 = vld [vmem:[#allocation5 + $0x8] sm:$0xff]  ;;  %v1737_v56 = vld [vmem:[#allocation5 + $0x40] sm:$0xff]  ;;  %v230_v58 = vadd.f32 %v1735_v55, %v1733_v54  ;;  %v262_v62 = vmax.f32 %v1733_v54, %v1735_v55  ;;  %v1756_v3 = vld [vmem:[%s2181_s0 + $0x70] sm:$0xff] }
  0x31   :  { %139 = vmax.xlane.f32.xlu1 %v138_v12  ;;  %v215_v53 = vadd.f32 %v1727_v51, %v1725_v50  ;;  %v1739_v57 = vld [vmem:[#allocation5 + $0x48] sm:$0xff]  ;;  %v247_v61 = vmax.f32 %v1725_v50, %v1727_v51  ;;  %v1761_v7 = vld [vmem:[%s2181_s0 + $0x78] sm:$0xff]  ;;  %v1766_v10 = vld [vmem:[%s2181_s0 + $0x30] sm:$0xff]  ;;  %vm667_vm14 = vcmask 785408   ;;  %vm885_vm15 = vcmask 1043459  }
  0x32   :  { %136 = vmax.xlane.f32.xlu0 %v135_v13  ;;  %v227_v59 = vadd.f32 %v1739_v57, %v1737_v56  ;;  %v259_v63 = vmax.f32 %v1737_v56, %v1739_v57  ;;  %v1771_v11 = vld [vmem:[%s2181_s0 + $0x38] sm:$0xff]  ;;  %v124_v12 = vadd.f32 %v1761_v7, %v1756_v3 }
  0x33   :  { %v112_v13 = vadd.f32 %v1771_v11, %v1766_v10 }
  0x35   :  { %151 = vmax.xlane.f32.xlu1 %v150_v14  ;;  %v156_v14 = vmax.f32 %v1756_v3, %v1761_v7 }
  0x36   :  { %148 = vmax.xlane.f32.xlu0 %v147_v15  ;;  %v144_v15 = vmax.f32 %v1766_v10, %v1771_v11 }
  0x39   :  { %163 = vadd.xlane.f32.xlu1 %v162_v20  ;;  %v1781_v20 = vld [vmem:[#allocation2 + $0x70] sm:$0xff] }
  0x3a   :  { %160 = vadd.xlane.f32.xlu0 %v159_v21  ;;  %v1783_v21 = vld [vmem:[#allocation2 + $0x78] sm:$0xff] }
  0x3d   :  { %175 = vadd.xlane.f32.xlu1 %v174_v26  ;;  %v1785_v26 = vld [vmem:[#allocation2 + $0x30] sm:$0xff] }
  0x3e   :  { %172 = vadd.xlane.f32.xlu0 %v171_v27  ;;  %v1787_v27 = vld [vmem:[#allocation2 + $0x38] sm:$0xff] }
  0x41   :  { %195 = vmax.xlane.f32.xlu1 %v194_v28  ;;  %v180_v28 = vadd.f32 %v1783_v21, %v1781_v20 }
  0x42   :  { %192 = vmax.xlane.f32.xlu0 %v191_v29  ;;  %v168_v29 = vadd.f32 %v1787_v27, %v1785_v26 }
  0x45   :  { %207 = vmax.xlane.f32.xlu1 %v206_v30  ;;  %v212_v30 = vmax.f32 %v1781_v20, %v1783_v21 }
  0x46   :  { %204 = vmax.xlane.f32.xlu0 %v203_v31  ;;  %v200_v31 = vmax.f32 %v1785_v26, %v1787_v27 }
  0x49   :  { %122 = vadd.xlane.f32.xlu1 %v121_v36  ;;  %v99_v36 = vld [vmem:[#allocation5 + $0x60] sm:$0xff] }
  0x4a   :  { %110 = vadd.xlane.f32.xlu0 %v109_v37  ;;  %v100_v37 = vld [vmem:[#allocation5 + $0x68] sm:$0xff] }
  0x4d   :  { %154 = vmax.xlane.f32.xlu1 %v153_v38  ;;  %v91_v38 = vld [vmem:[#allocation5 + $0x20] sm:$0xff] }
  0x4e   :  { %142 = vmax.xlane.f32.xlu0 %v141_v39  ;;  %v1797_v39 = vld [vmem:[#allocation5 + $0x28] sm:$0xff] }
  0x51   :  { %178 = vadd.xlane.f32.xlu1 %v177_v44  ;;  %v233_v44 = vadd.f32 %v100_v37, %v99_v36 }
  0x52   :  { %166 = vadd.xlane.f32.xlu0 %v165_v45  ;;  %v221_v45 = vadd.f32 %v1797_v39, %v91_v38 }
  0x55   :  { %210 = vmax.xlane.f32.xlu1 %v209_v46  ;;  %v265_v46 = vmax.f32 %v99_v36, %v100_v37 }
  0x56   :  { %198 = vmax.xlane.f32.xlu0 %v197_v47  ;;  %v253_v47 = vmax.f32 %v91_v38, %v1797_v39 }
  0x59   :  { %219 = vadd.xlane.f32.xlu1 %v218_v52  ;;  %v1801_v52 = vld [vmem:[#allocation5 + $0x70] sm:$0xff] }
  0x5a   :  { %216 = vadd.xlane.f32.xlu0 %v215_v53  ;;  %v1803_v53 = vld [vmem:[#allocation5 + $0x78] sm:$0xff] }
  0x5d   :  { %231 = vadd.xlane.f32.xlu1 %v230_v58  ;;  %v1805_v58 = vld [vmem:[#allocation5 + $0x30] sm:$0xff] }
  0x5e   :  { %228 = vadd.xlane.f32.xlu0 %v227_v59  ;;  %v1807_v59 = vld [vmem:[#allocation5 + $0x38] sm:$0xff] }
  0x61   :  { %251 = vmax.xlane.f32.xlu1 %v250_v60  ;;  %v236_v60 = vadd.f32 %v1803_v53, %v1801_v52 }
  0x62   :  { %248 = vmax.xlane.f32.xlu0 %v247_v61  ;;  %v273_v61 = vadd.f32 %v1645_v16, %v1626_v8  ;;  %v279_v8 = vadd.f32 %v1661_v24, %v1592_v0  ;;  %v268_v16 = vmax.f32 %v1801_v52, %v1803_v53  ;;  %v644_v0 = vld [vmem:[%s2184_s3] sm:$0xff] }
  0x65   :  { %263 = vmax.xlane.f32.xlu1 %v262_v62  ;;  %v274_v62 = vadd.f32 %v1647_v17, %v1631_v9  ;;  %v280_v9 = vadd.f32 %v1663_v25, %v1597_v1  ;;  %v645_v1 = vld [vmem:[%s2184_s3 + $0x8] sm:$0xff]  ;;  %v283_v25 = vadd.f32 %v1705_v40, %v1680_v32  ;;  %v646_v32 = vld [vmem:[%s2184_s3 + $0x10] sm:$0xff] }
  0x66   :  { %260 = vmax.xlane.f32.xlu0 %v259_v63  ;;  %v224_v63 = vadd.f32 %v1807_v59, %v1805_v58 }
  0x67   :  { %v296_v24 = vadd.f32 %v280_v9, %v1739_v57 }
  0x69   :  { %125 = vadd.xlane.f32.xlu1 %v124_v12  ;;  %v271_v12 = vadd.f32 %v1649_v18, %v1602_v2  ;;  %v289_v2 = vadd.f32 %v273_v61, %v1721_v48  ;;  %v284_v48 = vadd.f32 %v1707_v41, %v1685_v33  ;;  %v647_v33 = vld [vmem:[%s2184_s3 + $0x18] sm:$0xff] }
  0x6a   :  { %113 = vadd.xlane.f32.xlu0 %v112_v13  ;;  %v272_v13 = vadd.f32 %v1651_v19, %v1609_v4  ;;  %v290_v4 = vadd.f32 %v274_v62, %v1723_v49  ;;  %v1512_v49 = vmov 0.0|0.0   ;;  %v1355_v40 = vpack.c.bf16 %v647_v33, %v646_v32  ;;  %v654_v62 = vld [vmem:[%s2184_s3 + $0x50] sm:$0xff] }
  0x6b   :  { %1351 = vmatprep.subr.bf16.mxu0 %v1512_v49 }
  0x6c   :  { %v288_v17 = vadd.f32 %v272_v13, %v1727_v51  ;;  %v275_v51 = vadd.f32 %v1709_v42, %v1690_v34  ;;  %v299_v34 = vadd.f32 %v283_v25, %v99_v36  ;;  %v300_v42 = vadd.f32 %v284_v48, %v100_v37 }
  0x6d   :  { %157 = vmax.xlane.f32.xlu1 %v156_v14  ;;  %v281_v14 = vadd.f32 %v1657_v22, %v1614_v5  ;;  %v256_v5 = vmax.f32 %v1805_v58, %v1807_v59  ;;  %v1352_v22 = vpack.c.bf16 %v645_v1, %v644_v0  ;;  %v1514_v13 = vmov 0.0  }
  0x6e   :  { %145 = vmax.xlane.f32.xlu0 %v144_v15  ;;  %v282_v15 = vadd.f32 %v1659_v23, %v1619_v6  ;;  %v287_v6 = vadd.f32 %v271_v12, %v1725_v50  ;;  %v295_v23 = vadd.f32 %v279_v8, %v1737_v56  ;;  %v306_v50 = vmax.f32 %v289_v2, %v290_v4 }
  0x6f   :  { %v297_v18 = vadd.f32 %v281_v14, %v1733_v54  ;;  %1353 = vmatpush3.bf16.msra.mxu0 %v1352_v22  ;;  %v291_v57 = vadd.f32 %v275_v51, %v91_v38  ;;  %v321_v36 = vmax.f32 %v299_v34, %v300_v42  ;;  %1327 = vmatprep.mubr.msk.f32.mxu0 %vm1513_vm0, %v1514_v13  ;;  %v335_v14 = vlaneseq }
  0x70   :  { %v298_v19 = vadd.f32 %v282_v15, %v1735_v55  ;;  %v303_v54 = vmax.f32 %v287_v6, %v288_v17  ;;  %v276_v55 = vadd.f32 %v1711_v43, %v1695_v35  ;;  %1354 = vmatprep.subr.bf16.mxu0 %v1512_v49  ;;  %v315_v56 = vmax.f32 %v295_v23, %v296_v24 }
  0x71   :  { %181 = vadd.xlane.f32.xlu1 %v180_v28  ;;  %v285_v35 = vadd.f32 %v1781_v20, %v1756_v3  ;;  %v286_v43 = vadd.f32 %v1783_v21, %v1761_v7  ;;  %v649_v20 = vld [vmem:[%s2184_s3 + $0x28] sm:$0xff]  ;;  %1330 = vmatprep.subr.mxu1 %v1514_v13  ;;  %v1909_v15 = vand.u32 127, %v335_v14  ;;  %v1911_v8 = vshrl.u32 %v335_v14, 7 }
  0x72   :  { %169 = vadd.xlane.f32.xlu0 %v168_v29  ;;  %v318_v41 = vmax.f32 %v297_v18, %v298_v19  ;;  %v292_v28 = vadd.f32 %v276_v55, %v1797_v39  ;;  %v277_v29 = vadd.f32 %v1785_v26, %v1766_v10  ;;  %1332 = vmatprep.mubr.msk.f32.mxu1 %vm1513_vm0, %v1514_v13 }
  0x73   :  { %1356 = vmatpush3.bf16.msra.mxu0 %v1355_v40  ;;  %v301_v37 = vadd.f32 %v285_v35, %v1801_v52  ;;  %v302_v38 = vadd.f32 %v286_v43, %v1803_v53  ;;  %v341_v9 = vadd.s32 4294967288, %v1909_v15  ;;  %v1916_v4 = vsub.s32 %v1909_v15, %v1911_v8 }
  0x74   :  { %1357 = vmatprep.subr.bf16.mxu0 %v1512_v49  ;;  %v309_v39 = vmax.f32 %v291_v57, %v292_v28  ;;  %v397_v33 = vadd.s32 4294967256, %v1909_v15 }
  0x75   :  { %213 = vmax.xlane.f32.xlu1 %v212_v30  ;;  %v278_v30 = vadd.f32 %v1787_v27, %v1771_v11  ;;  %v324_v53 = vmax.f32 %v301_v37, %v302_v38  ;;  %v1919_v6 = vsub.s32 %v341_v9, %v1911_v8 }
  0x76   :  { %201 = vmax.xlane.f32.xlu0 %v200_v31  ;;  %v648_v31 = vld [vmem:[%s2184_s3 + $0x20] sm:$0xff]  ;;  %v1941_v35 = vsub.s32 %v397_v33, %v1911_v8 }
  0x77   :  { %v1358_v21 = vpack.c.bf16 %v649_v20, %v648_v31 }
  0x79   :  { %234 = vadd.xlane.f32.xlu1 %v233_v44  ;;  %1359 = vmatpush3.bf16.msra.mxu0 %v1358_v21  ;;  %v293_v44 = vadd.f32 %v277_v29, %v1805_v58  ;;  %v652_v58 = vld [vmem:[%s2184_s3 + $0x40] sm:$0xff] }
  0x7a   :  { %222 = vadd.xlane.f32.xlu0 %v221_v45  ;;  %v294_v45 = vadd.f32 %v278_v30, %v1807_v59  ;;  %1360 = vmatprep.subr.bf16.mxu0 %v1512_v49  ;;  %v653_v59 = vld [vmem:[%s2184_s3 + $0x48] sm:$0xff] }
  0x7b   :  { %v1364_v61 = vpack.c.bf16 %v653_v59, %v652_v58 }
  0x7d   :  { %266 = vmax.xlane.f32.xlu1 %v265_v46  ;;  %v650_v46 = vld [vmem:[%s2184_s3 + $0x30] sm:$0xff] }
  0x7e   :  { %254 = vmax.xlane.f32.xlu0 %v253_v47  ;;  %v651_v47 = vld [vmem:[%s2184_s3 + $0x38] sm:$0xff] }
  0x7f   :  { %v1361_v52 = vpack.c.bf16 %v651_v47, %v650_v46 }
  0x81   :  { %237 = vadd.xlane.f32.xlu1 %v236_v60  ;;  %1362 = vmatpush3.bf16.msra.mxu0 %v1361_v52  ;;  %v312_v60 = vmax.f32 %v293_v44, %v294_v45 }
  0x82   :  { %225 = vadd.xlane.f32.xlu0 %v224_v63  ;;  %1363 = vmatprep.subr.bf16.mxu0 %v1512_v49  ;;  %v655_v63 = vld [vmem:[%s2184_s3 + $0x58] sm:$0xff]  ;;  %s1515_s3 = smov 64  }
  0x83   :  { %v1367_v12 = vpack.c.bf16 %v655_v63, %v654_v62 }
  0x85   :  { %269 = vmax.xlane.f32.xlu1 %v268_v16  ;;  %1365 = vmatpush3.bf16.msra.mxu0 %v1364_v61 }
  0x86   :  { %257 = vmax.xlane.f32.xlu0 %v256_v5  ;;  %1366 = vmatprep.subr.bf16.mxu0 %v1512_v49 }
  0x89   :  { %307 = vmax.xlane.f32.xlu1 %v306_v50  ;;  %1368 = vmatpush3.bf16.msra.mxu0 %v1367_v12 }
  0x8a   :  { %304 = vmax.xlane.f32.xlu0 %v303_v54 }
  0x8d   :  { %319 = vmax.xlane.f32.xlu1 %v318_v41 }
  0x8e   :  { %316 = vmax.xlane.f32.xlu0 %v315_v56  ;;  %v392_v56 = vadd.s32 4294967264, %v1909_v15 }
  0x90   :  { %v1947_v29 = vsub.s32 %v392_v56, %v1911_v8  ;;  %v404_v56 = vadd.s32 4294967248, %v1909_v15 }
  0x91   :  { %322 = vmax.xlane.f32.xlu1 %v321_v36 }
  0x92   :  { %310 = vmax.xlane.f32.xlu0 %v309_v39 }
  0x95   :  { %325 = vmax.xlane.f32.xlu1 %v324_v53 }
  0x96   :  { %313 = vmax.xlane.f32.xlu0 %v312_v60 }
  0xb6   :  { %v117_v16 = vpop.xlane.xlu1 %116 }
  0xb7   :  { %v105_v2 = vpop.xlane.xlu0 %104  ;;  %v131_v5 = vmul.f32 0.00390625, %v117_v16 }
  0xb8   :  { %v127_v17 = vmul.f32 0.00390625, %v105_v2 }
  0xb9   :  { %v365_v22 = vrot.slane %v131_v5, %v1916_v4 }
  0xba   :  { %v120_v0 = vpop.xlane.xlu1 %119  ;;  %v340_v24 = vrot.slane %v127_v17, %v1916_v4 }
  0xbb   :  { %v132_v1 = vmul.f32 0.00390625, %v120_v0  ;;  %v108_v18 = vpop.xlane.xlu0 %107 }
  0xbc   :  { %v128_v19 = vmul.f32 0.00390625, %v108_v18 }
  0xbd   :  { %v369_v23 = vrot.slane %v132_v1, %v1919_v6 }
  0xbe   :  { %v345_v25 = vrot.slane %v128_v19, %v1919_v6  ;;  %v140_v48 = vpop.xlane.xlu1 %139 }
  0xbf   :  { %v1926_v50 = vsel %vm346_vm1, %v369_v23, %v365_v22  ;;  %v513_v51 = vrot.slane %v140_v48, %v1919_v6  ;;  %v137_v54 = vpop.xlane.xlu0 %136  ;;  %v348_v23 = vadd.s32 4294967280, %v1909_v15  ;;  %v355_v48 = vadd.s32 4294967272, %v1909_v15 }
  0xc0   :  { %v1930_v55 = vsel %vm346_vm1, %v345_v25, %v340_v24  ;;  %v509_v32 = vrot.slane %v137_v54, %v1916_v4 }
  0xc2   :  { %v1935_v40 = vsel %vm346_vm1, %v513_v51, %v509_v32  ;;  %v152_v41 = vpop.xlane.xlu1 %151  ;;  %v1987_v51 = vsub.s32 %v348_v23, %v1911_v8 }
  0xc3   :  { %v532_v34 = vrot.slane %v152_v41, %v1919_v6  ;;  %v149_v42 = vpop.xlane.xlu0 %148 }
  0xc4   :  { %v528_v57 = vrot.slane %v149_v42, %v1916_v4 }
  0xc6   :  { %v1944_v43 = vsel %vm346_vm1, %v532_v34, %v528_v57  ;;  %v164_v28 = vpop.xlane.xlu1 %163  ;;  %v1995_v34 = vsub.s32 %v355_v48, %v1911_v8 }
  0xc7   :  { %v184_v30 = vmul.f32 0.00390625, %v164_v28  ;;  %v161_v31 = vpop.xlane.xlu0 %160 }
  0xc8   :  { %v183_v20 = vmul.f32 0.00390625, %v161_v31 }
  0xc9   :  { %v401_v21 = vrot.slane %v184_v30, %v1941_v35 }
  0xca   :  { %v396_v36 = vrot.slane %v183_v20, %v1947_v29  ;;  %v176_v37 = vpop.xlane.xlu1 %175 }
  0xcb   :  { %v188_v38 = vmul.f32 0.00390625, %v176_v37  ;;  %v173_v39 = vpop.xlane.xlu0 %172  ;;  %v407_v37 = vsub.s32 %v404_v56, %v1911_v8 }
  0xcc   :  { %v1952_v44 = vsel %vm402_vm2, %v401_v21, %v396_v36  ;;  %v187_v45 = vmul.f32 0.00390625, %v173_v39  ;;  %v411_v39 = vadd.s32 4294967240, %v1909_v15 }
  0xcd   :  { %v425_v46 = vrot.slane %v188_v38, %v1941_v35 }
  0xce   :  { %v421_v47 = vrot.slane %v187_v45, %v1947_v29  ;;  %v196_v52 = vpop.xlane.xlu1 %195 }
  0xcf   :  { %v561_v53 = vrot.slane %v196_v52, %v1941_v35  ;;  %v193_v60 = vpop.xlane.xlu0 %192 }
  0xd0   :  { %v1958_v58 = vsel %vm402_vm2, %v425_v46, %v421_v47  ;;  %v557_v59 = vrot.slane %v193_v60, %v1947_v29 }
  0xd2   :  { %v1962_v61 = vsel %vm402_vm2, %v561_v53, %v557_v59  ;;  %v1964_v62 = vpop.xlane.xlu1 %207 }
  0xd3   :  { %v1966_v63 = vpop.xlane.xlu0 %204  ;;  %v580_v48 = vrot.slane %v1964_v62, %v1941_v35 }
  0xd4   :  { %v576_v56 = vrot.slane %v1966_v63, %v1947_v29 }
  0xd6   :  { %v123_v12 = vpop.xlane.xlu1 %122  ;;  %v581_v29 = vsel %vm402_vm2, %v580_v48, %v576_v56  ;;  %vm742_vm2 = vcmask 48128  }
  0xd7   :  { %v111_v14 = vpop.xlane.xlu0 %110  ;;  %v133_v54 = vmul.f32 0.00390625, %v123_v12 }
  0xd8   :  { %v129_v33 = vmul.f32 0.00390625, %v111_v14 }
  0xd9   :  { %v374_v42 = vrot.slane %v133_v54, %v1987_v51 }
  0xda   :  { %v155_v9 = vpop.xlane.xlu1 %154  ;;  %v352_v28 = vrot.slane %v129_v33, %v1987_v51 }
  0xdb   :  { %v143_v16 = vpop.xlane.xlu0 %142  ;;  %v537_v20 = vrot.slane %v155_v9, %v1987_v51  ;;  %v375_v45 = vsel %vm353_vm3, %v374_v42, %v1926_v50 }
  0xdc   :  { %v518_v36 = vrot.slane %v143_v16, %v1987_v51  ;;  %v354_v53 = vsel %vm353_vm3, %v352_v28, %v1930_v55  ;;  %v414_v55 = vsub.s32 %v411_v39, %v1911_v8 }
  0xdd   :  { %v538_v9 = vsel %vm353_vm3, %v537_v20, %v1944_v43 }
  0xde   :  { %v179_v2 = vpop.xlane.xlu1 %178 }
  0xdf   :  { %v167_v5 = vpop.xlane.xlu0 %166  ;;  %v189_v46 = vmul.f32 0.00390625, %v179_v2  ;;  %v519_v2 = vsel %vm353_vm3, %v518_v36, %v1935_v40 }
  0xe0   :  { %v185_v60 = vmul.f32 0.00390625, %v167_v5 }
  0xe1   :  { %v430_v54 = vrot.slane %v189_v46, %v407_v37 }
  0xe2   :  { %v1968_v17 = vpop.xlane.xlu1 %210  ;;  %v408_v42 = vrot.slane %v185_v60, %v407_v37  ;;  %v459_v60 = vadd.s32 4294967216, %v1909_v15 }
  0xe3   :  { %v1970_v0 = vpop.xlane.xlu0 %198  ;;  %v431_v62 = vsel %vm409_vm6, %v430_v54, %v1958_v58 }
  0xe4   :  { %v566_v20 = vrot.slane %v1970_v0, %v407_v37  ;;  %v410_v63 = vsel %vm409_vm6, %v408_v42, %v1952_v44  ;;  %v452_v0 = vadd.s32 4294967224, %v1909_v15 }
  0xe6   :  { %v1972_v1 = vpop.xlane.xlu1 %219  ;;  %v567_v58 = vsel %vm409_vm6, %v566_v20, %v1962_v61 }
  0xe7   :  { %v1974_v18 = vpop.xlane.xlu0 %216  ;;  %v240_v48 = vmul.f32 0.00390625, %v1972_v1 }
  0xe8   :  { %v239_v54 = vmul.f32 0.00390625, %v1974_v18 }
  0xea   :  { %v1976_v19 = vpop.xlane.xlu1 %231 }
  0xeb   :  { %v1978_v22 = vpop.xlane.xlu0 %228 }
  0xee   :  { %v1981_v24 = vpop.xlane.xlu1 %251 }
  0xef   :  { %v1983_v25 = vpop.xlane.xlu0 %248 }
  0xf2   :  { %v1989_v32 = vpop.xlane.xlu1 %263 }
  0xf3   :  { %v1991_v41 = vpop.xlane.xlu0 %260 }
  0xf6   :  { %v126_v57 = vpop.xlane.xlu1 %125 }
  0xf7   :  { %v134_v30 = vmul.f32 0.00390625, %v126_v57  ;;  %v114_v31 = vpop.xlane.xlu0 %113 }
  0xf8   :  { %v130_v21 = vmul.f32 0.00390625, %v114_v31 }
  0xf9   :  { %v379_v38 = vrot.slane %v134_v30, %v1995_v34  ;;  %v585_v30 = vrot.slane %v1968_v17, %v407_v37 }
  0xfa   :  { %v359_v47 = vrot.slane %v130_v21, %v1995_v34  ;;  %v158_v52 = vpop.xlane.xlu1 %157 }
  0xfb   :  { %v380_v59 = vsel %vm360_vm4, %v379_v38, %v375_v45  ;;  %v542_v12 = vrot.slane %v158_v52, %v1995_v34  ;;  %v146_v14 = vpop.xlane.xlu0 %145  ;;  %v586_v45 = vsel %vm409_vm6, %v585_v30, %v581_v29 }
  0xfc   :  { %v361_v16 = vsel %vm360_vm4, %v359_v47, %v354_v53  ;;  %v523_v50 = vrot.slane %v146_v14, %v1995_v34  ;;  %v447_v47 = vadd.s32 4294967232, %v1909_v15 }
  0xfd   :  { %v543_v23 = vsel %vm360_vm4, %v542_v12, %v538_v9  ;;  %v382_v5 = vsel %vm381_vm5, %v380_v59, %v361_v16  ;;  %v455_v16 = vsub.s32 %v452_v0, %v1911_v8 }
  0xfe   :  { %v524_v43 = vsel %vm360_vm4, %v523_v50, %v519_v2  ;;  %v182_v33 = vpop.xlane.xlu1 %181  ;;  %v450_v50 = vsub.s32 %v447_v47, %v1911_v8  ;;  %v244_v2 = vmul.f32 0.00390625, %v1976_v19 }
  0xff   :  { %v544_v40 = vsel %vm381_vm5, %v543_v23, %v524_v43  ;;  %v190_v57 = vmul.f32 0.00390625, %v182_v33  ;;  %v170_v28 = vpop.xlane.xlu0 %169  ;;  %v243_v23 = vmul.f32 0.00390625, %v1978_v22  ;;  %v628_v1 = vrot.slane %v1989_v32, %v455_v16 }
 0x100   :  { %v186_v31 = vmul.f32 0.00390625, %v170_v28  ;;  %v456_v28 = vrot.slane %v240_v48, %v455_v16  ;;  %v451_v22 = vrot.slane %v239_v54, %v450_v50  ;;  %v624_v18 = vrot.slane %v1991_v41, %v450_v50 }
 0x101   :  { %v435_v35 = vrot.slane %v190_v57, %v414_v55  ;;  %v476_v57 = vrot.slane %v243_v23, %v450_v50 }
 0x102   :  { %v415_v21 = vrot.slane %v186_v31, %v414_v55  ;;  %v214_v36 = vpop.xlane.xlu1 %213  ;;  %v629_v41 = vsel %vm457_vm9, %v628_v1, %v624_v18 }
 0x103   :  { %v436_v38 = vsel %vm416_vm7, %v435_v35, %v431_v62  ;;  %v590_v39 = vrot.slane %v214_v36, %v414_v55  ;;  %v202_v17 = vpop.xlane.xlu0 %201  ;;  %v609_v62 = vrot.slane %v1981_v24, %v455_v16 }
 0x104   :  { %v417_v37 = vsel %vm416_vm7, %v415_v21, %v410_v63  ;;  %v571_v46 = vrot.slane %v202_v17, %v414_v55  ;;  %v466_v55 = vadd.s32 4294967208, %v1909_v15  ;;  %v605_v21 = vrot.slane %v1983_v25, %v450_v50 }
 0x105   :  { %v591_v52 = vsel %vm416_vm7, %v590_v39, %v586_v45  ;;  %v437_v44 = vsel %vm381_vm5, %v436_v38, %v417_v37  ;;  %v458_v17 = vsel %vm457_vm9, %v456_v28, %v451_v22 }
 0x106   :  { %v572_v53 = vsel %vm416_vm7, %v571_v46, %v567_v58  ;;  %v235_v59 = vpop.xlane.xlu1 %234  ;;  %v495_v12 = vsel %vm494_vm8, %v382_v5, %v437_v44  ;;  %v462_v5 = vsub.s32 %v459_v60, %v1911_v8  ;;  %v469_v19 = vsub.s32 %v466_v55, %v1911_v8 }
 0x107   :  { %v592_v14 = vsel %vm381_vm5, %v591_v52, %v572_v53  ;;  %v223_v9 = vpop.xlane.xlu0 %222  ;;  %v245_v43 = vmul.f32 0.00390625, %v235_v59  ;;  %v610_v58 = vsel %vm457_vm9, %v609_v62, %v605_v21 }
 0x108   :  { %v642_v61 = vsel %vm494_vm8, %v544_v40, %v592_v14  ;;  %v241_v56 = vmul.f32 0.00390625, %v223_v9  ;;  %v480_v40 = vrot.slane %v244_v2, %v455_v16 }
 0x109   :  { %v485_v30 = vrot.slane %v245_v43, %v462_v5 }
 0x10a   :  { %v267_v33 = vpop.xlane.xlu1 %266  ;;  %v463_v31 = vrot.slane %v241_v56, %v462_v5  ;;  %v481_v63 = vsel %vm457_vm9, %v480_v40, %v476_v57 }
 0x10b   :  { %v255_v42 = vpop.xlane.xlu0 %254  ;;  %v633_v36 = vrot.slane %v267_v33, %v462_v5  ;;  %v486_v45 = vsel %vm464_vm10, %v485_v30, %v481_v63 }
 0x10c   :  { %v614_v38 = vrot.slane %v255_v42, %v462_v5  ;;  %v465_v37 = vsel %vm464_vm10, %v463_v31, %v458_v17 }
 0x10d   :  { %v634_v47 = vsel %vm464_vm10, %v633_v36, %v629_v41 }
 0x10e   :  { %v238_v15 = vpop.xlane.xlu1 %237  ;;  %v615_v53 = vsel %vm464_vm10, %v614_v38, %v610_v58  ;;  %v659_v38 = vld [vmem:[%s2186_s5 + $0x10] sm:$0xff] }
 0x10f   :  { %v246_v20 = vmul.f32 0.00390625, %v238_v15  ;;  %v226_v35 = vpop.xlane.xlu0 %225 }
 0x110   :  { %v242_v29 = vmul.f32 0.00390625, %v226_v35  ;;  %v657_v35 = vld [vmem:[%s2186_s5] sm:$0xff] }
 0x111   :  { %v490_v39 = vrot.slane %v246_v20, %v469_v19 }
 0x112   :  { %v470_v32 = vrot.slane %v242_v29, %v469_v19  ;;  %v270_v0 = vpop.xlane.xlu1 %269 }
 0x113   :  { %v491_v24 = vsel %vm471_vm11, %v490_v39, %v486_v45  ;;  %v638_v25 = vrot.slane %v270_v0, %v469_v19  ;;  %v258_v46 = vpop.xlane.xlu0 %257  ;;  %v660_v39 = vld [vmem:[%s2186_s5 + $0x18] sm:$0xff] }
 0x114   :  { %v472_v52 = vsel %vm471_vm11, %v470_v32, %v465_v37  ;;  %v619_v44 = vrot.slane %v258_v46, %v469_v19  ;;  %v1373_v45 = vpack.c.bf16 %v660_v39, %v659_v38  ;;  %v661_v37 = vld [vmem:[%s2187_s6] sm:$0xff] }
 0x115   :  { %v639_v60 = vsel %vm471_vm11, %v638_v25, %v634_v47  ;;  %v492_v59 = vsel %vm381_vm5, %v491_v24, %v472_v52  ;;  %v1402_v39 = vld [vmem:[%s2181_s0 + $0x40] sm:$0xff] }
 0x116   :  { %v620_v14 = vsel %vm471_vm11, %v619_v44, %v615_v53  ;;  %v497_v9 = vsel %vm496_vm12, %v495_v12, %v492_v59  ;;  %v308_v16 = vpop.xlane.xlu1 %307 }
 0x117   :  { %v640_v50 = vsel %vm381_vm5, %v639_v60, %v620_v14  ;;  %835 = vrot.lane.b32.xlu1 %v497_v9, %s1515_s3  ;;  %831 = vrot.lane.b32.xlu0 %v497_v9, %s1516_s14  ;;  %v305_v2 = vpop.xlane.xlu0 %304  ;;  %v854_v43 = vrot.slane %v308_v16, %v1919_v6 }
 0x118   :  { %v643_v23 = vsel %vm496_vm12, %v642_v61, %v640_v50  ;;  %v850_v33 = vrot.slane %v305_v2, %v1916_v4 }
 0x119   :  { %v663_v55 = vrot.slane %v643_v23, 6 }
 0x11a   :  { %v320_v48 = vpop.xlane.xlu1 %319  ;;  %v855_v19 = vsel %vm346_vm1, %v854_v43, %v850_v33 }
 0x11b   :  { %v666_v54 = vsel %vm665_vm13, %v497_v9, %v663_v55  ;;  %v873_v5 = vrot.slane %v320_v48, %v1919_v6  ;;  %v317_v12 = vpop.xlane.xlu0 %316 }
 0x11c   :  { %1328 = vmatmul.mubr.msk.f32.vlgmr.msra.gmra.mrb[0].mxu0 %vm667_vm14, %v666_v54  ;;  %v869_v56 = vrot.slane %v317_v12, %v1916_v4  ;;  %v1060_v12 = vsub.s32 0, %v1911_v8 }
 0x11e   :  { %v323_v42 = vpop.xlane.xlu1 %322  ;;  %v874_v40 = vsel %vm346_vm1, %v873_v5, %v869_v56  ;;  %vm746_vm1 = vcmask 1045504  }
 0x11f   :  { %v878_v61 = vrot.slane %v323_v42, %v1987_v51  ;;  %v311_v57 = vpop.xlane.xlu0 %310 }
 0x120   :  { %v859_v28 = vrot.slane %v311_v57, %v1987_v51  ;;  %v656_v51 = vld [vmem:[%s2185_s4] sm:$0x3f] }
 0x121   :  { %v879_v22 = vsel %vm353_vm3, %v878_v61, %v874_v40  ;;  %1331 = vmatpush3.msk.msra.mxu1 %vm746_vm1, %v656_v51  ;;  %v1079_v40 = vsub.s32 1, %v1911_v8 }
 0x122   :  { %v326_v30 = vpop.xlane.xlu1 %325  ;;  %v860_v15 = vsel %vm353_vm3, %v859_v28, %v855_v19  ;;  %1369 = vmatprep.subr.bf16.mxu1 %v1512_v49  ;;  %vm963_vm3 = vcmask 64512   ;;  %v1394_v19 = vld [vmem:[%s2181_s0 + $0x10] sm:$0xff] }
 0x123   :  { %v883_v6 = vrot.slane %v326_v30, %v1995_v34  ;;  %v314_v1 = vpop.xlane.xlu0 %313 }
 0x124   :  { %v864_v4 = vrot.slane %v314_v1, %v1995_v34  ;;  %v658_v34 = vld [vmem:[%s2186_s5 + $0x8] sm:$0xff] }
 0x125   :  { %v884_v18 = vsel %vm360_vm4, %v883_v6, %v879_v22  ;;  %v1370_v36 = vpack.c.bf16 %v658_v34, %v657_v35  ;;  %v1395_v22 = vld [vmem:[%s2181_s0 + $0x18] sm:$0xff]  ;;  %v1397_v1 = vld [vmem:[%s2181_s0 + $0x8] sm:$0xff]  ;;  %v1398_v35 = vld [vmem:[%s2181_s0 + $0x20] sm:$0xff] }
 0x126   :  { %v865_v31 = vsel %vm360_vm4, %v864_v4, %v860_v15  ;;  %v1396_v15 = vld [vmem:[%s2181_s0] sm:$0xff] }
 0x127   :  { %v886_v20 = vsel %vm885_vm15, %v884_v18, %v865_v31 }
 0x189   :  { %v832_v62 = vpop.permute.xlu0 %831  ;;  %v836_v32 = vpop.permute.xlu1 %835 }
 0x18a   :  { %v834_v17 = vadd.f32 %v832_v62, %v497_v9  ;;  %v1399_v62 = vld [vmem:[%s2181_s0 + $0x28] sm:$0xff] }
 0x18c   :  { %v838_v0 = vadd.f32 %v836_v32, %v834_v17 }
 0x18e   :  { %v888_v41 = vsel %vm665_vm13, %v838_v0, %v886_v20 }
 0x1ef   :  { %v737_v21 = vpop.f32.mrb[0].mxu0 }
 0x1f0   :  { %v741_v29 = vmax.f32 %v737_v21, 0.0  ;;  %v1329_v63 = vpop.f32.mrb[1].mxu0 }
 0x1f1   :  { %v1401_v63 = vld [vmem:[%s2181_s0 + $0x58] sm:$0xff] }
 0x1f2   :  { %1333 = vmatmul.mubr.msk.f32.vlgmr.msra.gmra.mrb[0].mxu1 %vm742_vm2, %v741_v29 }
 0x1f3   :  { %1371 = vmatpush3.bf16.msra.mxu1 %v1370_v36  ;;  %1343 = vmatprep.mubr.msk.f32.mxu1 %vm1513_vm0, %v1514_v13 }
 0x1f4   :  { %1372 = vmatprep.subr.bf16.mxu1 %v1512_v49 }
 0x1f7   :  { %1374 = vmatpush3.bf16.msra.mxu1 %v1373_v45  ;;  %v1403_v45 = vld [vmem:[%s2181_s0 + $0x48] sm:$0xff] }
 0x1f8   :  { %1346 = vmatprep.subr.mxu1 %v1514_v13 }
 0x1fa   :  { %1344 = vmatmul.mubr.msk.f32.vlgmr.msra.gmra.mrb[2].mxu1 %vm494_vm8, %v888_v41 }
 0x1fb   :  { %1348 = vmatprep.mubr.msk.f32.mxu1 %vm1513_vm0, %v1514_v13  ;;  %1347 = vmatpush3.msra.mxu1 %v661_v37 }
 0x2c5   :  { %v816_v24 = vpop.f32.mrb[0].mxu1 }
 0x2c6   :  { %v1334_v25 = vpop.f32.mrb[1].mxu1  ;;  %v821_v9 = vrot.slane %v816_v24, 2 }
 0x2c7   :  { %v1404_v25 = vld [vmem:[%s2181_s0 + $0x60] sm:$0xff] }
 0x2c8   :  { %v823_v16 = vadd.f32 %v821_v9, %v816_v24 }
 0x2ca   :  { %v1277_v50 = vmul.f32 -1.442695, %v823_v16 }
 0x2cd   :  { %v958_v46 = vpop.f32.mrb[2].mxu1 }
 0x2ce   :  { %v962_v49 = vmax.f32 %v958_v46, 0.0  ;;  %v1345_v58 = vpop.f32.mrb[3].mxu1 }
 0x2d0   :  { %1349 = vmatmul.mubr.msk.f32.vlgmr.msra.gmra.mrb[4].mxu1 %vm963_vm3, %v962_v49  ;;  %v1405_v49 = vld [vmem:[%s2181_s0 + $0x68] sm:$0xff] }
 0x3a3   :  { %v1033_v47 = vpop.f32.mrb[4].mxu1 }
 0x3a4   :  { %v1038_v52 = vrot.slane %v1033_v47, 2  ;;  %v1350_v44 = vpop.f32.mrb[5].mxu1 }
 0x3a5   :  { %v1406_v44 = vld [vmem:[#allocation2 + $0x10] sm:$0xff] }
 0x3a6   :  { %v1040_v53 = vadd.f32 %v1038_v52, %v1033_v47 }
 0x3a8   :  { %v1280_v60 = vmul.f32 -1.442695, %v1040_v53  ;;  %v1407_v53 = vld [vmem:[#allocation2 + $0x18] sm:$0xff] }
 0x3aa   :  { %1386 = vpow2.f32 %v1280_v60  ;;  %v1408_v60 = vld [vmem:[#allocation2] sm:$0xff] }
 0x3b4   :  { %v1387_v59 = vpop.eup %1386 }
 0x3b5   :  { %v1044_v13 = vadd.f32 1.0, %v1387_v59 }
 0x3b7   :  { %1388 = vrcp.f32 %v1044_v13  ;;  %v1409_v13 = vld [vmem:[#allocation2 + $0x8] sm:$0xff] }
 0x3b8   :  { %1390 = vpow2.f32 %v1277_v50 }
 0x3c1   :  { %v1389_v14 = vpop.eup %1388 }
 0x3c2   :  { %1049 = vrot.lane.b32.xlu1 %v1389_v14, %s1517_s1  ;;  %v1391_v2 = vpop.eup %1390 }
 0x3c3   :  { %v827_v23 = vadd.f32 1.0, %v1391_v2 }
 0x3c5   :  { %1392 = vrcp.f32 %v827_v23  ;;  %v1410_v23 = vld [vmem:[#allocation2 + $0x20] sm:$0xff] }
 0x3c6   :  { %1052 = vrot.lane.b32.xlu1 %v1389_v14, %s1515_s3 }
 0x3cf   :  { %v1393_v48 = vpop.eup %1392 }
 0x3d0   :  { %v1047_v5 = vadd.f32 1.0, %v1393_v48  ;;  %v1411_v48 = vld [vmem:[#allocation2 + $0x28] sm:$0xff] }
 0x434   :  { %v1050_v55 = vpop.permute.xlu1 %1049 }
 0x435   :  { %v1055_v54 = vsel %vm494_vm8, %v1389_v14, %v1050_v55 }
 0x438   :  { %v1053_v43 = vpop.permute.xlu1 %1052 }
 0x439   :  { %v1056_v33 = vsel %vm496_vm12, %v1055_v54, %v1053_v43  ;;  %v1412_v43 = vld [vmem:[#allocation2 + $0x50] sm:$0xff] }
 0x43a   :  { %v1057_v56 = vadd.f32 %v1056_v33, %v1047_v5 }
 0x43c   :  { %v1061_v42 = vrot.slane %v1057_v56, %v1060_v12  ;;  %v1080_v61 = vrot.slane %v1057_v56, %v1079_v40  ;;  %v1413_v56 = vld [vmem:[#allocation2 + $0x58] sm:$0xff]  ;;  %v1414_v40 = vld [vmem:[#allocation2 + $0x40] sm:$0xff] }
 0x43e   :  { %1067 = vbcast.lane.b32.xlu1 %v1061_v42, 264  ;;  %1063 = vbcast.lane.b32.xlu0 %v1061_v42, 256 }
 0x442   :  { %1075 = vbcast.lane.b32.xlu1 %v1061_v42, 280  ;;  %1071 = vbcast.lane.b32.xlu0 %v1061_v42, 272 }
 0x446   :  { %1086 = vbcast.lane.b32.xlu1 %v1080_v61, 264  ;;  %1082 = vbcast.lane.b32.xlu0 %v1080_v61, 256 }
 0x44a   :  { %1094 = vbcast.lane.b32.xlu1 %v1080_v61, 280  ;;  %1090 = vbcast.lane.b32.xlu0 %v1080_v61, 272 }
 0x44e   :  { %1134 = vbcast.lane.b32.xlu1 %v1061_v42, 296  ;;  %1130 = vbcast.lane.b32.xlu0 %v1061_v42, 288 }
 0x452   :  { %1142 = vbcast.lane.b32.xlu1 %v1061_v42, 312  ;;  %1138 = vbcast.lane.b32.xlu0 %v1061_v42, 304 }
 0x456   :  { %1150 = vbcast.lane.b32.xlu1 %v1080_v61, 296  ;;  %1146 = vbcast.lane.b32.xlu0 %v1080_v61, 288 }
 0x45a   :  { %1158 = vbcast.lane.b32.xlu1 %v1080_v61, 312  ;;  %1154 = vbcast.lane.b32.xlu0 %v1080_v61, 304 }
 0x45e   :  { %1198 = vbcast.lane.b32.xlu1 %v1061_v42, 328  ;;  %1194 = vbcast.lane.b32.xlu0 %v1061_v42, 320 }
 0x462   :  { %1206 = vbcast.lane.b32.xlu1 %v1061_v42, 344  ;;  %1202 = vbcast.lane.b32.xlu0 %v1061_v42, 336 }
 0x466   :  { %1214 = vbcast.lane.b32.xlu1 %v1080_v61, 328  ;;  %1210 = vbcast.lane.b32.xlu0 %v1080_v61, 320 }
 0x46a   :  { %1222 = vbcast.lane.b32.xlu1 %v1080_v61, 344  ;;  %1218 = vbcast.lane.b32.xlu0 %v1080_v61, 336 }
 0x4b0   :  { %v1068_v8 = vpop.permute.xlu1 %1067  ;;  %v1064_v57 = vpop.permute.xlu0 %1063 }
 0x4b1   :  { %v1098_v28 = vmul.f32 %v1394_v19, %v1068_v8  ;;  %v1099_v30 = vmul.f32 %v1395_v22, %v1068_v8  ;;  %v1096_v6 = vmul.f32 %v1396_v15, %v1064_v57  ;;  %v1097_v4 = vmul.f32 %v1397_v1, %v1064_v57  ;;  %v1415_v8 = vld [vmem:[#allocation2 + $0x48] sm:$0xff]  ;;  %v1416_v19 = vld [vmem:[#allocation2 + $0x70] sm:$0xff]  ;;  %v1417_v22 = vld [vmem:[#allocation2 + $0x78] sm:$0xff] }
 0x4b2   :  { %v1418_v15 = vld [vmem:[#allocation2 + $0x60] sm:$0xff]  ;;  %v1419_v1 = vld [vmem:[#allocation2 + $0x68] sm:$0xff] }
 0x4b3   :  { %1114 = vst [vmem:[#allocation7 + $0x10] sm:$0xff] %v1098_v28  ;;  %1115 = vst [vmem:[#allocation7 + $0x18] sm:$0xff] %v1099_v30 }
 0x4b4   :  { %1112 = vst [vmem:[#allocation7] sm:$0xff] %v1096_v6  ;;  %1113 = vst [vmem:[#allocation7 + $0x8] sm:$0xff] %v1097_v4  ;;  %v1076_v18 = vpop.permute.xlu1 %1075  ;;  %v1072_v31 = vpop.permute.xlu0 %1071 }
 0x4b5   :  { %v1102_v20 = vmul.f32 %v1076_v18, %v1766_v10  ;;  %v1103_v51 = vmul.f32 %v1076_v18, %v1771_v11  ;;  %v1100_v34 = vmul.f32 %v1398_v35, %v1072_v31  ;;  %v1101_v21 = vmul.f32 %v1399_v62, %v1072_v31  ;;  %v1400_v10 = vld [vmem:[%s2181_s0 + $0x50] sm:$0xff]  ;;  %v1421_v35 = vld [vmem:[#allocation5 + $0x18] sm:$0xff]  ;;  %v1422_v62 = vld [vmem:[#allocation5] sm:$0xff]  ;;  %s1518_s0 = smov [#allocation7]  }
 0x4b6   :  { %s1261_s5 = sshll.u32 %s1518_s0, 4  ;;  %s1262_s5 = int_to_ptr.vmem [resolvable:$true] %s1261_s5 }
 0x4b7   :  { %1118 = vst [vmem:[#allocation7 + $0x30] sm:$0xff] %v1102_v20  ;;  %1119 = vst [vmem:[#allocation7 + $0x38] sm:$0xff] %v1103_v51  ;;  %v1420_v20 = vld [vmem:[#allocation5 + $0x10] sm:$0xff]  ;;  %s1480_s24 = scalar_lea.vmem %s1262_s5, 6144  ;;  %p1485_p3 = scmp.lt.s32.totalorder %s1262_s5, %s1262_s5 }
 0x4b8   :  { %1116 = vst [vmem:[#allocation7 + $0x20] sm:$0xff] %v1100_v34  ;;  %1117 = vst [vmem:[#allocation7 + $0x28] sm:$0xff] %v1101_v21  ;;  %v1087_v36 = vpop.permute.xlu1 %1086  ;;  %v1083_v29 = vpop.permute.xlu0 %1082  ;;  %p1481_p2 = scmp.ne.s32.totalorder %s1262_s5, %s1480_s24  ;;  %p1486_p4 = scmp.lt.s32.totalorder %s1480_s24, %s1480_s24 }
 0x4b9   :  { %v1106_v11 = vmul.f32 %v1400_v10, %v1087_v36  ;;  %v1107_v38 = vmul.f32 %v1401_v63, %v1087_v36  ;;  %v1104_v17 = vmul.f32 %v1402_v39, %v1083_v29  ;;  %v1105_v32 = vmul.f32 %v1403_v45, %v1083_v29  ;;  %v1423_v36 = vld [vmem:[#allocation5 + $0x8] sm:$0xff]  ;;  %v1424_v63 = vld [vmem:[#allocation5 + $0x30] sm:$0xff]  ;;  %v1425_v39 = vld [vmem:[#allocation5 + $0x38] sm:$0xff] }
 0x4ba   :  { %v1426_v45 = vld [vmem:[#allocation5 + $0x20] sm:$0xff]  ;;  %p1487_p5 = por %p1486_p4, %p1485_p3 }
 0x4bb   :  { %1122 = vst [vmem:[#allocation7 + $0xd0] sm:$0xff] %v1106_v11  ;;  %1123 = vst [vmem:[#allocation7 + $0xd8] sm:$0xff] %v1107_v38 }
 0x4bc   :  { %1120 = vst [vmem:[#allocation7 + $0xc0] sm:$0xff] %v1104_v17  ;;  %1121 = vst [vmem:[#allocation7 + $0xc8] sm:$0xff] %v1105_v32  ;;  %v1095_v0 = vpop.permute.xlu1 %1094  ;;  %v1091_v41 = vpop.permute.xlu0 %1090  ;;  %p1488_p6 = pnand %p1487_p5, %p1481_p2 }
 0x4bd   :  { %v1110_v37 = vmul.f32 %v1095_v0, %v1756_v3  ;;  %v1111_v24 = vmul.f32 %v1095_v0, %v1761_v7  ;;  %v1108_v46 = vmul.f32 %v1404_v25, %v1091_v41  ;;  %v1109_v58 = vmul.f32 %v1405_v49, %v1091_v41  ;;  %v1427_v0 = vld [vmem:[#allocation5 + $0x28] sm:$0xff]  ;;  %v1428_v25 = vld [vmem:[#allocation5 + $0x50] sm:$0xff]  ;;  %v1429_v49 = vld [vmem:[#allocation5 + $0x58] sm:$0xff] }
 0x4bf   :  { %1126 = vst [vmem:[#allocation7 + $0xf0] sm:$0xff] %v1110_v37  ;;  %1127 = vst [vmem:[#allocation7 + $0xf8] sm:$0xff] %v1111_v24 }
 0x4c0   :  { %1124 = vst [vmem:[#allocation7 + $0xe0] sm:$0xff] %v1108_v46  ;;  %1125 = vst [vmem:[#allocation7 + $0xe8] sm:$0xff] %v1109_v58  ;;  %v1135_v47 = vpop.permute.xlu1 %1134  ;;  %v1131_v52 = vpop.permute.xlu0 %1130 }
 0x4c1   :  { %v1162_v3 = vmul.f32 %v1406_v44, %v1135_v47  ;;  %v1163_v7 = vmul.f32 %v1407_v53, %v1135_v47  ;;  %v1160_v59 = vmul.f32 %v1408_v60, %v1131_v52  ;;  %v1161_v14 = vmul.f32 %v1409_v13, %v1131_v52  ;;  %v1430_v47 = vld [vmem:[#allocation5 + $0x40] sm:$0xff]  ;;  %v1431_v44 = vld [vmem:[#allocation5 + $0x48] sm:$0xff]  ;;  %v1432_v60 = vld [vmem:[#allocation5 + $0x70] sm:$0xff] }
 0x4c2   :  { %v1433_v13 = vld [vmem:[#allocation5 + $0x78] sm:$0xff] }
 0x4c3   :  { %1178 = vst [vmem:[#allocation7 + $0x50] sm:$0xff] %v1162_v3  ;;  %1179 = vst [vmem:[#allocation7 + $0x58] sm:$0xff] %v1163_v7 }
 0x4c4   :  { %1176 = vst [vmem:[#allocation7 + $0x40] sm:$0xff] %v1160_v59  ;;  %1177 = vst [vmem:[#allocation7 + $0x48] sm:$0xff] %v1161_v14  ;;  %v1143_v9 = vpop.permute.xlu1 %1142  ;;  %v1139_v16 = vpop.permute.xlu0 %1138 }
 0x4c5   :  { %v1166_v50 = vmul.f32 %v1143_v9, %v1785_v26  ;;  %v1167_v2 = vmul.f32 %v1143_v9, %v1787_v27  ;;  %v1164_v55 = vmul.f32 %v1410_v23, %v1139_v16  ;;  %v1165_v54 = vmul.f32 %v1411_v48, %v1139_v16  ;;  %v1434_v9 = vld [vmem:[#allocation5 + $0x60] sm:$0xff] }
 0x4c7   :  { %1182 = vst [vmem:[#allocation7 + $0x70] sm:$0xff] %v1166_v50  ;;  %1183 = vst [vmem:[#allocation7 + $0x78] sm:$0xff] %v1167_v2  ;;  %v1435_v50 = vld [vmem:[#allocation5 + $0x68] sm:$0xff] }
 0x4c8   :  { %1180 = vst [vmem:[#allocation7 + $0x60] sm:$0xff] %v1164_v55  ;;  %1181 = vst [vmem:[#allocation7 + $0x68] sm:$0xff] %v1165_v54  ;;  %v1151_v5 = vpop.permute.xlu1 %1150  ;;  %v1147_v12 = vpop.permute.xlu0 %1146 }
 0x4c9   :  { %v1170_v33 = vmul.f32 %v1412_v43, %v1151_v5  ;;  %v1171_v42 = vmul.f32 %v1413_v56, %v1151_v5  ;;  %v1168_v61 = vmul.f32 %v1414_v40, %v1147_v12  ;;  %v1169_v26 = vmul.f32 %v1415_v8, %v1147_v12 }
 0x4cb   :  { %1186 = vst [vmem:[#allocation7 + $0x110] sm:$0xff] %v1170_v33  ;;  %1187 = vst [vmem:[#allocation7 + $0x118] sm:$0xff] %v1171_v42 }
 0x4cc   :  { %1184 = vst [vmem:[#allocation7 + $0x100] sm:$0xff] %v1168_v61  ;;  %1185 = vst [vmem:[#allocation7 + $0x108] sm:$0xff] %v1169_v26  ;;  %v1159_v27 = vpop.permute.xlu1 %1158  ;;  %v1155_v57 = vpop.permute.xlu0 %1154 }
 0x4cd   :  { %v1174_v28 = vmul.f32 %v1416_v19, %v1159_v27  ;;  %v1175_v30 = vmul.f32 %v1417_v22, %v1159_v27  ;;  %v1172_v6 = vmul.f32 %v1418_v15, %v1155_v57  ;;  %v1173_v4 = vmul.f32 %v1419_v1, %v1155_v57 }
 0x4cf   :  { %1190 = vst [vmem:[#allocation7 + $0x130] sm:$0xff] %v1174_v28  ;;  %1191 = vst [vmem:[#allocation7 + $0x138] sm:$0xff] %v1175_v30 }
 0x4d0   :  { %1188 = vst [vmem:[#allocation7 + $0x120] sm:$0xff] %v1172_v6  ;;  %1189 = vst [vmem:[#allocation7 + $0x128] sm:$0xff] %v1173_v4  ;;  %v1199_v18 = vpop.permute.xlu1 %1198  ;;  %v1195_v31 = vpop.permute.xlu0 %1194 }
 0x4d1   :  { %v1226_v51 = vmul.f32 %v1420_v20, %v1199_v18  ;;  %v1227_v34 = vmul.f32 %v1421_v35, %v1199_v18  ;;  %v1224_v21 = vmul.f32 %v1422_v62, %v1195_v31  ;;  %v1225_v29 = vmul.f32 %v1423_v36, %v1195_v31 }
 0x4d3   :  { %1242 = vst [vmem:[#allocation7 + $0x90] sm:$0xff] %v1226_v51  ;;  %1243 = vst [vmem:[#allocation7 + $0x98] sm:$0xff] %v1227_v34 }
 0x4d4   :  { %1240 = vst [vmem:[#allocation7 + $0x80] sm:$0xff] %v1224_v21  ;;  %1241 = vst [vmem:[#allocation7 + $0x88] sm:$0xff] %v1225_v29  ;;  %v1207_v10 = vpop.permute.xlu1 %1206  ;;  %v1203_v11 = vpop.permute.xlu0 %1202 }
 0x4d5   :  { %v1230_v38 = vmul.f32 %v1424_v63, %v1207_v10  ;;  %v1231_v17 = vmul.f32 %v1425_v39, %v1207_v10  ;;  %v1228_v32 = vmul.f32 %v1426_v45, %v1203_v11  ;;  %v1229_v41 = vmul.f32 %v1427_v0, %v1203_v11 }
 0x4d7   :  { %1246 = vst [vmem:[#allocation7 + $0xb0] sm:$0xff] %v1230_v38  ;;  %1247 = vst [vmem:[#allocation7 + $0xb8] sm:$0xff] %v1231_v17 }
 0x4d8   :  { %1244 = vst [vmem:[#allocation7 + $0xa0] sm:$0xff] %v1228_v32  ;;  %1245 = vst [vmem:[#allocation7 + $0xa8] sm:$0xff] %v1229_v41  ;;  %v1215_v37 = vpop.permute.xlu1 %1214  ;;  %v1211_v24 = vpop.permute.xlu0 %1210 }
 0x4d9   :  { %v1234_v46 = vmul.f32 %v1428_v25, %v1215_v37  ;;  %v1235_v58 = vmul.f32 %v1429_v49, %v1215_v37  ;;  %v1232_v52 = vmul.f32 %v1430_v47, %v1211_v24  ;;  %v1233_v3 = vmul.f32 %v1431_v44, %v1211_v24 }
 0x4db   :  { %1250 = vst [vmem:[#allocation7 + $0x150] sm:$0xff] %v1234_v46  ;;  %1251 = vst [vmem:[#allocation7 + $0x158] sm:$0xff] %v1235_v58 }
 0x4dc   :  { %1248 = vst [vmem:[#allocation7 + $0x140] sm:$0xff] %v1232_v52  ;;  %1249 = vst [vmem:[#allocation7 + $0x148] sm:$0xff] %v1233_v3  ;;  %v1223_v53 = vpop.permute.xlu1 %1222  ;;  %v1219_v7 = vpop.permute.xlu0 %1218 }
 0x4dd   :  { %v1238_v59 = vmul.f32 %v1432_v60, %v1223_v53  ;;  %v1239_v14 = vmul.f32 %v1433_v13, %v1223_v53  ;;  %v1236_v16 = vmul.f32 %v1434_v9, %v1219_v7  ;;  %v1237_v2 = vmul.f32 %v1435_v50, %v1219_v7 }
 0x4df   :  { %1254 = vst [vmem:[#allocation7 + $0x170] sm:$0xff] %v1238_v59  ;;  %1255 = vst [vmem:[#allocation7 + $0x178] sm:$0xff] %v1239_v14 }
 0x4e0   :  { %1252 = vst [vmem:[#allocation7 + $0x160] sm:$0xff] %v1236_v16  ;;  %1253 = vst [vmem:[#allocation7 + $0x168] sm:$0xff] %v1237_v2 }
 0x4e1   :  { %1491 = shalt.err (!%p1488_p6)
}
 0x4e2   :  { %s1492_s25 = scalar_lea.hbm %s2188_s7, 6144 }
 0x4e3   :  { %p1493_p7 = scmp.ne.s32.totalorder %s2188_s7, %s1492_s25  ;;  %p1496_p8 = scmp.lt.u32.totalorder %s1492_s25, %s2188_s7 }
 0x4e5   :  { %p1498_p9 = pnand %p1496_p8, %p1493_p7 }
 0x4e7   :  { %1501 = shalt.err (!%p1498_p9)
}
 0x4e8   :  { %1267 = dma.vmem_to_hbm [thread:$0]  %s1262_s5, 6144, %s2188_s7, [#allocation4], %s1509_s11, %s1509_s11, %s1510_s12  }
 0x4e9   :  { %1506 = dma.done.wait [#allocation4], 6144  }
 0x4ea   :  { %1507 = vsyncadd [#allocation4], 4294961152 }
 0x4eb   :  { %1271 = vsyncpa [#allocation3], 1 }
 0x4ec   :  { %1272 = vsyncpa [#allocation6], 1 }
 0x4ed   :  { %1273 = vsyncpa [#allocation4], 1 }

</bundles_post_ra>
